<compile_context>
chip_gen: v7x
topology: tpu7x:2x2x1
jax: 0.10.0
libtpu: 0.0.40
codegen_flags: <defaults>
</compile_context>

<pallas_src>
import math

import jax
import jax.numpy as jnp
from jax.experimental import pallas as pl
from jax.experimental.pallas import tpu as pltpu


def _round_up(x, m):
    return ((x + m - 1) // m) * m


def _gru_kernel(x_ref, len_ref, wih_ref, whh_ref, bias_g_ref, bhn_ref,
                h_out_ref, gates_ref):
    """Whole GRU forward in a single grid step.

    x_ref      : (T*Bp, Dp)   bf16  time-major, zero-padded input
    len_ref    : (Bp, 1)      int32 sequence lengths
    wih_ref    : (Dp, 3*Hp)   bf16  fused input weights  (gate order r, z, n)
    whh_ref    : (Hp, 3*Hp)   bf16  fused hidden weights
    bias_g_ref : (1, 3*Hp)    f32   b_ih (+ b_hh for r, z) folded biases
    bhn_ref    : (1, Hp)      f32   b_hh of the n gate (stays inside r*(...))
    h_out_ref  : (Bp, Hp)     f32   h_n[-1]
    gates_ref  : (T*Bp, 3*Hp) f32   VMEM scratch: hoisted input projections
    """
    Bp, Hp = h_out_ref.shape
    T = x_ref.shape[0] // Bp

    # Hoisted input projection: one large MXU matmul covering every timestep
    # and every gate, with all gate-independent biases already folded in.
    gates_ref[...] = (
        jnp.dot(x_ref[...], wih_ref[...], preferred_element_type=jnp.float32)
        + bias_g_ref[...])

    lengths = len_ref[...]                 # (Bp, 1) int32
    whh = whh_ref[...]                     # (Hp, 3*Hp) bf16
    b_hn = bhn_ref[...]                    # (1, Hp) f32

    def step(t, h_prev):
        row = pl.multiple_of(t * Bp, Bp)
        g = gates_ref[pl.ds(row, Bp), :]                        # (Bp, 3*Hp)
        hh = jnp.dot(h_prev.astype(whh.dtype), whh,
                     preferred_element_type=jnp.float32)        # (Bp, 3*Hp)
        r = jax.nn.sigmoid(g[:, :Hp] + hh[:, :Hp])
        z = jax.nn.sigmoid(g[:, Hp:2 * Hp] + hh[:, Hp:2 * Hp])
        n = jnp.tanh(g[:, 2 * Hp:] + r * (hh[:, 2 * Hp:] + b_hn))
        h_new = (1.0 - z) * n + z * h_prev
        # pack_padded_sequence semantics: freeze h past each sequence length,
        # so after the loop h == h_n[-1] (hidden at the last valid timestep).
        return jnp.where(t < lengths, h_new, h_prev)

    h0 = jnp.zeros((Bp, Hp), jnp.float32)
    h_last = jax.lax.fori_loop(0, T, step, h0, unroll=(T <= 16))
    h_out_ref[...] = h_last
    # TODO(synk): GRU wrapper applies nn.Dropout(0.1) only when training;
    # eval-mode dropout is the identity, so it is omitted here.
    # TODO(synk): for the large text client (D=300, H=600) with long sequences
    # the (T*Bp, 3*Hp) gate buffer should be streamed in time chunks
    # (emit_pipeline / Buffered specs) instead of being fully VMEM-resident,
    # and W_hh could be held weight-stationary on the MXU (matmul_push_rhs).


def gru_last_hidden(seqs, lengths, kernel_params, indim, hiddim):
    """Pallas forward: returns h_n[-1] of shape (B, H)."""
    wih, whh, bias_g, b_hn = kernel_params
    B, T, D = seqs.shape
    Dp = wih.shape[0]
    Hp = b_hn.shape[1]
    Bp = _round_up(max(B, 1), 8)

    # time-major, batch/feature zero-padded, bf16 for the MXU
    x = jnp.zeros((T, Bp, Dp), jnp.bfloat16)
    x = x.at[:, :B, :D].set(jnp.transpose(seqs, (1, 0, 2)).astype(jnp.bfloat16))
    x2d = x.reshape(T * Bp, Dp)
    len_col = jnp.zeros((Bp, 1), jnp.int32).at[:B, 0].set(
        lengths.astype(jnp.int32))

    grid_spec = pltpu.PrefetchScalarGridSpec(
        num_scalar_prefetch=0,
        grid=(1,),                                 # time loop lives in-kernel
        in_specs=[
            pl.BlockSpec((T * Bp, Dp), lambda i: (0, 0)),    # all timesteps
            pl.BlockSpec((Bp, 1), lambda i: (0, 0)),         # lengths
            pl.BlockSpec((Dp, 3 * Hp), lambda i: (0, 0)),    # fused W_ih^T
            pl.BlockSpec((Hp, 3 * Hp), lambda i: (0, 0)),    # fused W_hh^T
            pl.BlockSpec((1, 3 * Hp), lambda i: (0, 0)),     # folded biases
            pl.BlockSpec((1, Hp), lambda i: (0, 0)),         # b_hh[n]
        ],
        out_specs=pl.BlockSpec((Bp, Hp), lambda i: (0, 0)),
        scratch_shapes=[pltpu.VMEM((T * Bp, 3 * Hp), jnp.float32)],
    )

    h_padded = pl.pallas_call(
        _gru_kernel,
        out_shape=jax.ShapeDtypeStruct((Bp, Hp), jnp.float32),
        grid_spec=grid_spec,
        compiler_params=pltpu.CompilerParams(
            dimension_semantics=("arbitrary",)),   # single sequential step
    )(x2d, len_col, wih, whh, bias_g, b_hn)

    return h_padded[:B, :hiddim]


def make_gru_params(key, indim, hiddim):
    """torch.nn.GRU init: uniform(-1/sqrt(H), 1/sqrt(H)) for all params."""
    k = 1.0 / math.sqrt(hiddim)
    k1, k2, k3, k4 = jax.random.split(key, 4)
    w_ih = jax.random.uniform(k1, (3 * hiddim, indim), jnp.float32, -k, k)
    w_hh = jax.random.uniform(k2, (3 * hiddim, hiddim), jnp.float32, -k, k)
    b_ih = jax.random.uniform(k3, (3 * hiddim,), jnp.float32, -k, k)
    b_hh = jax.random.uniform(k4, (3 * hiddim,), jnp.float32, -k, k)
    return w_ih, w_hh, b_ih, b_hh


def prepare_kernel_params(raw, indim, hiddim):
    """Fuse gates, fold biases, pad to TPU-friendly shapes, cast to bf16."""
    w_ih, w_hh, b_ih, b_hh = raw
    Dp = _round_up(indim, 128)
    Hp = _round_up(hiddim, 128)

    def fuse_pad(w, rows, rows_p):
        # w: (3*H, rows) torch layout, gate-major rows [r; z; n]
        w3 = w.reshape(3, hiddim, rows)                       # (3, H, rows)
        out = jnp.zeros((3, rows_p, Hp), jnp.float32)
        out = out.at[:, :rows, :hiddim].set(jnp.transpose(w3, (0, 2, 1)))
        return out.transpose(1, 0, 2).reshape(rows_p, 3 * Hp)  # cols [r|z|n]

    wih = fuse_pad(w_ih, indim, Dp).astype(jnp.bfloat16)       # (Dp, 3*Hp)
    whh = fuse_pad(w_hh, hiddim, Hp).astype(jnp.bfloat16)      # (Hp, 3*Hp)

    bi = b_ih.reshape(3, hiddim)
    bh = b_hh.reshape(3, hiddim)
    # fold b_ih (all gates) and b_hh (r, z) into the hoisted input projection;
    # only b_hh[n] must stay inside the per-step r*(h@W_hn + b_hn) term.
    bias3 = jnp.stack([bi[0] + bh[0], bi[1] + bh[1], bi[2]])   # (3, H)
    bias_g = jnp.zeros((3, Hp), jnp.float32).at[:, :hiddim].set(bias3)
    bias_g = bias_g.reshape(1, 3 * Hp)
    b_hn = jnp.zeros((1, Hp), jnp.float32).at[0, :hiddim].set(bh[2])
    return wih, whh, bias_g, b_hn


def gru_last_hidden_reference(seqs, lengths, raw, hiddim):
    """Pure-JAX f32 reference (lax.scan, torch.nn.GRU equations)."""
    w_ih, w_hh, b_ih, b_hh = raw
    B, T, _ = seqs.shape
    H = hiddim

    def step(h, inp):
        x_t, t = inp
        gi = x_t @ w_ih.T + b_ih                     # (B, 3H) order r, z, n
        gh = h @ w_hh.T + b_hh
        r = jax.nn.sigmoid(gi[:, :H] + gh[:, :H])
        z = jax.nn.sigmoid(gi[:, H:2 * H] + gh[:, H:2 * H])
        n = jnp.tanh(gi[:, 2 * H:] + r * gh[:, 2 * H:])
        h_new = (1.0 - z) * n + z * h
        h = jnp.where((t < lengths)[:, None], h_new, h)
        return h, None

    h0 = jnp.zeros((B, H), jnp.float32)
    x_tbd = jnp.transpose(seqs, (1, 0, 2)).astype(jnp.float32)
    h_last, _ = jax.lax.scan(step, h0, (x_tbd, jnp.arange(T)))
    return h_last


class LocalModelForMOSIPallas:
    """client_number selects the modality backbone (V/A/T GRU -> h_n[-1])."""
    _CFG = {0: (35, 70), 1: (74, 200), 2: (300, 600)}

    def __init__(self, client_number, key):
        indim, hiddim = self._CFG.get(client_number, self._CFG[2])
        self.indim, self.hiddim = indim, hiddim
        self.raw_params = make_gru_params(key, indim, hiddim)
        self.kernel_params = prepare_kernel_params(
            self.raw_params, indim, hiddim)

    def __call__(self, x):
        seqs, lengths = x            # has_padding=True -> tuple input
        return gru_last_hidden(seqs, lengths, self.kernel_params,
                               self.indim, self.hiddim)


if __name__ == "__main__":
    key = jax.random.PRNGKey(0)
    k_param, k_x = jax.random.split(key)

    # small shapes consistent with the MOSI visual client (client_number=0)
    B, T, D_IN = 2, 8, 35
    model = LocalModelForMOSIPallas(client_number=0, key=k_param)

    x = jax.random.normal(k_x, (B, T, D_IN), jnp.float32)
    lengths = jnp.array([8, 5], dtype=jnp.int32)      # variable valid lengths

    out = model((x, lengths))                         # (B, 70)
    out = jax.block_until_ready(out)

    ref = gru_last_hidden_reference(x, lengths, model.raw_params, model.hiddim)
    assert out.shape == (B, model.hiddim)
    # bf16 weights in the kernel vs f32 reference -> loose tolerance
    assert jnp.allclose(out, ref, atol=2e-2, rtol=2e-2), "mismatch vs reference"

    print("KERNEL_OK")
</pallas_src>

<mosaic_0001>
module attributes {stable_mosaic.version = 11 : i64} {
  func.func @_gru_kernel(%arg0: i32, %arg1: memref<64x128xbf16, #tpu.memory_space<vmem>>, %arg2: memref<8x1xi32, #tpu.memory_space<vmem>>, %arg3: memref<128x384xbf16, #tpu.memory_space<vmem>>, %arg4: memref<128x384xbf16, #tpu.memory_space<vmem>>, %arg5: memref<1x384xf32, #tpu.memory_space<vmem>>, %arg6: memref<1x128xf32, #tpu.memory_space<vmem>>, %arg7: memref<8x128xf32, #tpu.memory_space<vmem>>, %arg8: memref<64x384xf32, #tpu.memory_space<vmem>>) attributes {dimension_semantics = [#tpu.dimension_semantics<arbitrary>], iteration_bounds = array<i64: 1>, scalar_prefetch = 0 : i64, scratch_operands = 1 : i64, tpu.core_type = #tpu.core_type<tc>, window_params = [{pipeline_mode = #tpu.pipeline_mode<synchronous>, transform_indices = @transform_0, window_bounds = array<i64: 64, 128>}, {pipeline_mode = #tpu.pipeline_mode<synchronous>, transform_indices = @transform_1, window_bounds = array<i64: 8, 1>}, {pipeline_mode = #tpu.pipeline_mode<synchronous>, transform_indices = @transform_2, window_bounds = array<i64: 128, 384>}, {pipeline_mode = #tpu.pipeline_mode<synchronous>, transform_indices = @transform_3, window_bounds = array<i64: 128, 384>}, {pipeline_mode = #tpu.pipeline_mode<synchronous>, transform_indices = @transform_4, window_bounds = array<i64: 1, 384>}, {pipeline_mode = #tpu.pipeline_mode<synchronous>, transform_indices = @transform_5, window_bounds = array<i64: 1, 128>}, {pipeline_mode = #tpu.pipeline_mode<synchronous>, transform_indices = @transform_6, window_bounds = array<i64: 8, 128>}]} {
    %c0 = arith.constant 0 : index
    %c0_0 = arith.constant 0 : index
    %0 = vector.load %arg1[%c0, %c0_0] : memref<64x128xbf16, #tpu.memory_space<vmem>>, vector<64x128xbf16>
    %c0_1 = arith.constant 0 : index
    %c0_2 = arith.constant 0 : index
    %1 = vector.load %arg3[%c0_1, %c0_2] : memref<128x384xbf16, #tpu.memory_space<vmem>>, vector<128x384xbf16>
    %cst = arith.constant dense<0.000000e+00> : vector<64x384xf32>
    %2 = tpu.matmul %0, %1, %cst {dimension_numbers = #tpu.dot_dimension_numbers<[1], [0], [0], [1], [0, 0, 1, 1], [], []>} : vector<64x128xbf16>, vector<128x384xbf16>, vector<64x384xf32> -> vector<64x384xf32>
    %c0_3 = arith.constant 0 : index
    %c0_4 = arith.constant 0 : index
    %3 = vector.load %arg5[%c0_3, %c0_4] : memref<1x384xf32, #tpu.memory_space<vmem>>, vector<1x384xf32>
    %4 = vector.broadcast %3 : vector<1x384xf32> to vector<64x384xf32>
    %5 = arith.addf %2, %4 : vector<64x384xf32>
    %c0_5 = arith.constant 0 : index
    %c0_6 = arith.constant 0 : index
    %6 = vector.load %arg8[%c0_5, %c0_6] : memref<64x384xf32, #tpu.memory_space<vmem>>, vector<64x384xf32>
    tpu.vector_store %arg8[%c0_5, %c0_6], %5 {strides = array<i32>} : memref<64x384xf32, #tpu.memory_space<vmem>>, vector<64x384xf32>,
    %c0_7 = arith.constant 0 : index
    %c0_8 = arith.constant 0 : index
    %7 = vector.load %arg2[%c0_7, %c0_8] : memref<8x1xi32, #tpu.memory_space<vmem>>, vector<8x1xi32>
    %c0_9 = arith.constant 0 : index
    %c0_10 = arith.constant 0 : index
    %8 = vector.load %arg4[%c0_9, %c0_10] : memref<128x384xbf16, #tpu.memory_space<vmem>>, vector<128x384xbf16>
    %c0_11 = arith.constant 0 : index
    %c0_12 = arith.constant 0 : index
    %9 = vector.load %arg6[%c0_11, %c0_12] : memref<1x128xf32, #tpu.memory_space<vmem>>, vector<1x128xf32>
    %cst_13 = arith.constant 0.000000e+00 : f32
    %10 = vector.broadcast %cst_13 : f32 to vector<8x128xf32>
    %c0_i32 = arith.constant 0 : i32
    %c8_i32 = arith.constant 8 : i32
    %11 = arith.muli %c0_i32, %c8_i32 : i32
    %12 = tpu.assume_multiple %11, 8 : i32
    %13 = arith.index_cast %12 : i32 to index
    %c0_14 = arith.constant 0 : index
    %14 = vector.load %arg8[%13, %c0_14] : memref<64x384xf32, #tpu.memory_space<vmem>>, vector<8x384xf32>
    %15 = arith.truncf %10 : vector<8x128xf32> to vector<8x128xbf16>
    %cst_15 = arith.constant dense<0.000000e+00> : vector<8x384xf32>
    %16 = tpu.matmul %15, %8, %cst_15 {dimension_numbers = #tpu.dot_dimension_numbers<[1], [0], [0], [1], [0, 0, 1, 1], [], []>} : vector<8x128xbf16>, vector<128x384xbf16>, vector<8x384xf32> -> vector<8x384xf32>
    %17 = vector.extract_strided_slice %14 {offsets = [0, 0], sizes = [8, 128], strides = [1, 1]} : vector<8x384xf32> to vector<8x128xf32>
    %18 = vector.extract_strided_slice %16 {offsets = [0, 0], sizes = [8, 128], strides = [1, 1]} : vector<8x384xf32> to vector<8x128xf32>
    %19 = arith.addf %17, %18 : vector<8x128xf32>
    %20 = arith.negf %19 : vector<8x128xf32>
    %21 = math.exp %20 : vector<8x128xf32>
    %cst_16 = arith.constant 1.000000e+00 : f32
    %22 = vector.broadcast %cst_16 : f32 to vector<8x128xf32>
    %23 = arith.addf %22, %21 : vector<8x128xf32>
    %24 = arith.divf %22, %23 : vector<8x128xf32>
    %25 = vector.extract_strided_slice %14 {offsets = [0, 128], sizes = [8, 128], strides = [1, 1]} : vector<8x384xf32> to vector<8x128xf32>
    %26 = vector.extract_strided_slice %16 {offsets = [0, 128], sizes = [8, 128], strides = [1, 1]} : vector<8x384xf32> to vector<8x128xf32>
    %27 = arith.addf %25, %26 : vector<8x128xf32>
    %28 = arith.negf %27 : vector<8x128xf32>
    %29 = math.exp %28 : vector<8x128xf32>
    %cst_17 = arith.constant 1.000000e+00 : f32
    %30 = vector.broadcast %cst_17 : f32 to vector<8x128xf32>
    %31 = arith.addf %30, %29 : vector<8x128xf32>
    %32 = arith.divf %30, %31 : vector<8x128xf32>
    %33 = vector.extract_strided_slice %14 {offsets = [0, 256], sizes = [8, 128], strides = [1, 1]} : vector<8x384xf32> to vector<8x128xf32>
    %34 = vector.extract_strided_slice %16 {offsets = [0, 256], sizes = [8, 128], strides = [1, 1]} : vector<8x384xf32> to vector<8x128xf32>
    %35 = vector.broadcast %9 : vector<1x128xf32> to vector<8x128xf32>
    %36 = arith.addf %34, %35 : vector<8x128xf32>
    %37 = arith.mulf %24, %36 : vector<8x128xf32>
    %38 = arith.addf %33, %37 : vector<8x128xf32>
    %39 = math.tanh %38 : vector<8x128xf32>
    %cst_18 = arith.constant 1.000000e+00 : f32
    %40 = vector.broadcast %cst_18 : f32 to vector<8x128xf32>
    %41 = arith.subf %40, %32 : vector<8x128xf32>
    %42 = arith.mulf %41, %39 : vector<8x128xf32>
    %43 = arith.mulf %32, %10 : vector<8x128xf32>
    %44 = arith.addf %42, %43 : vector<8x128xf32>
    %45 = vector.broadcast %c0_i32 : i32 to vector<8x1xi32>
    %46 = arith.cmpi slt, %45, %7 : vector<8x1xi32>
    %47 = vector.shape_cast %46 : vector<8x1xi1> to vector<8x1xi1>
    %48 = vector.broadcast %47 : vector<8x1xi1> to vector<8x128xi1>
    %49 = arith.select %48, %44, %10 : vector<8x128xi1>, vector<8x128xf32>
    %c1_i32 = arith.constant 1 : i32
    %c8_i32_19 = arith.constant 8 : i32
    %50 = arith.muli %c1_i32, %c8_i32_19 : i32
    %51 = tpu.assume_multiple %50, 8 : i32
    %52 = arith.index_cast %51 : i32 to index
    %c0_20 = arith.constant 0 : index
    %53 = vector.load %arg8[%52, %c0_20] : memref<64x384xf32, #tpu.memory_space<vmem>>, vector<8x384xf32>
    %54 = arith.truncf %49 : vector<8x128xf32> to vector<8x128xbf16>
    %cst_21 = arith.constant dense<0.000000e+00> : vector<8x384xf32>
    %55 = tpu.matmul %54, %8, %cst_21 {dimension_numbers = #tpu.dot_dimension_numbers<[1], [0], [0], [1], [0, 0, 1, 1], [], []>} : vector<8x128xbf16>, vector<128x384xbf16>, vector<8x384xf32> -> vector<8x384xf32>
    %56 = vector.extract_strided_slice %53 {offsets = [0, 0], sizes = [8, 128], strides = [1, 1]} : vector<8x384xf32> to vector<8x128xf32>
    %57 = vector.extract_strided_slice %55 {offsets = [0, 0], sizes = [8, 128], strides = [1, 1]} : vector<8x384xf32> to vector<8x128xf32>
    %58 = arith.addf %56, %57 : vector<8x128xf32>
    %59 = arith.negf %58 : vector<8x128xf32>
    %60 = math.exp %59 : vector<8x128xf32>
    %cst_22 = arith.constant 1.000000e+00 : f32
    %61 = vector.broadcast %cst_22 : f32 to vector<8x128xf32>
    %62 = arith.addf %61, %60 : vector<8x128xf32>
    %63 = arith.divf %61, %62 : vector<8x128xf32>
    %64 = vector.extract_strided_slice %53 {offsets = [0, 128], sizes = [8, 128], strides = [1, 1]} : vector<8x384xf32> to vector<8x128xf32>
    %65 = vector.extract_strided_slice %55 {offsets = [0, 128], sizes = [8, 128], strides = [1, 1]} : vector<8x384xf32> to vector<8x128xf32>
    %66 = arith.addf %64, %65 : vector<8x128xf32>
    %67 = arith.negf %66 : vector<8x128xf32>
    %68 = math.exp %67 : vector<8x128xf32>
    %cst_23 = arith.constant 1.000000e+00 : f32
    %69 = vector.broadcast %cst_23 : f32 to vector<8x128xf32>
    %70 = arith.addf %69, %68 : vector<8x128xf32>
    %71 = arith.divf %69, %70 : vector<8x128xf32>
    %72 = vector.extract_strided_slice %53 {offsets = [0, 256], sizes = [8, 128], strides = [1, 1]} : vector<8x384xf32> to vector<8x128xf32>
    %73 = vector.extract_strided_slice %55 {offsets = [0, 256], sizes = [8, 128], strides = [1, 1]} : vector<8x384xf32> to vector<8x128xf32>
    %74 = vector.broadcast %9 : vector<1x128xf32> to vector<8x128xf32>
    %75 = arith.addf %73, %74 : vector<8x128xf32>
    %76 = arith.mulf %63, %75 : vector<8x128xf32>
    %77 = arith.addf %72, %76 : vector<8x128xf32>
    %78 = math.tanh %77 : vector<8x128xf32>
    %cst_24 = arith.constant 1.000000e+00 : f32
    %79 = vector.broadcast %cst_24 : f32 to vector<8x128xf32>
    %80 = arith.subf %79, %71 : vector<8x128xf32>
    %81 = arith.mulf %80, %78 : vector<8x128xf32>
    %82 = arith.mulf %71, %49 : vector<8x128xf32>
    %83 = arith.addf %81, %82 : vector<8x128xf32>
    %84 = vector.broadcast %c1_i32 : i32 to vector<8x1xi32>
    %85 = arith.cmpi slt, %84, %7 : vector<8x1xi32>
    %86 = vector.shape_cast %85 : vector<8x1xi1> to vector<8x1xi1>
    %87 = vector.broadcast %86 : vector<8x1xi1> to vector<8x128xi1>
    %88 = arith.select %87, %83, %49 : vector<8x128xi1>, vector<8x128xf32>
    %c2_i32 = arith.constant 2 : i32
    %c8_i32_25 = arith.constant 8 : i32
    %89 = arith.muli %c2_i32, %c8_i32_25 : i32
    %90 = tpu.assume_multiple %89, 8 : i32
    %91 = arith.index_cast %90 : i32 to index
    %c0_26 = arith.constant 0 : index
    %92 = vector.load %arg8[%91, %c0_26] : memref<64x384xf32, #tpu.memory_space<vmem>>, vector<8x384xf32>
    %93 = arith.truncf %88 : vector<8x128xf32> to vector<8x128xbf16>
    %cst_27 = arith.constant dense<0.000000e+00> : vector<8x384xf32>
    %94 = tpu.matmul %93, %8, %cst_27 {dimension_numbers = #tpu.dot_dimension_numbers<[1], [0], [0], [1], [0, 0, 1, 1], [], []>} : vector<8x128xbf16>, vector<128x384xbf16>, vector<8x384xf32> -> vector<8x384xf32>
    %95 = vector.extract_strided_slice %92 {offsets = [0, 0], sizes = [8, 128], strides = [1, 1]} : vector<8x384xf32> to vector<8x128xf32>
    %96 = vector.extract_strided_slice %94 {offsets = [0, 0], sizes = [8, 128], strides = [1, 1]} : vector<8x384xf32> to vector<8x128xf32>
    %97 = arith.addf %95, %96 : vector<8x128xf32>
    %98 = arith.negf %97 : vector<8x128xf32>
    %99 = math.exp %98 : vector<8x128xf32>
    %cst_28 = arith.constant 1.000000e+00 : f32
    %100 = vector.broadcast %cst_28 : f32 to vector<8x128xf32>
    %101 = arith.addf %100, %99 : vector<8x128xf32>
    %102 = arith.divf %100, %101 : vector<8x128xf32>
    %103 = vector.extract_strided_slice %92 {offsets = [0, 128], sizes = [8, 128], strides = [1, 1]} : vector<8x384xf32> to vector<8x128xf32>
    %104 = vector.extract_strided_slice %94 {offsets = [0, 128], sizes = [8, 128], strides = [1, 1]} : vector<8x384xf32> to vector<8x128xf32>
    %105 = arith.addf %103, %104 : vector<8x128xf32>
    %106 = arith.negf %105 : vector<8x128xf32>
    %107 = math.exp %106 : vector<8x128xf32>
    %cst_29 = arith.constant 1.000000e+00 : f32
    %108 = vector.broadcast %cst_29 : f32 to vector<8x128xf32>
    %109 = arith.addf %108, %107 : vector<8x128xf32>
    %110 = arith.divf %108, %109 : vector<8x128xf32>
    %111 = vector.extract_strided_slice %92 {offsets = [0, 256], sizes = [8, 128], strides = [1, 1]} : vector<8x384xf32> to vector<8x128xf32>
    %112 = vector.extract_strided_slice %94 {offsets = [0, 256], sizes = [8, 128], strides = [1, 1]} : vector<8x384xf32> to vector<8x128xf32>
    %113 = vector.broadcast %9 : vector<1x128xf32> to vector<8x128xf32>
    %114 = arith.addf %112, %113 : vector<8x128xf32>
    %115 = arith.mulf %102, %114 : vector<8x128xf32>
    %116 = arith.addf %111, %115 : vector<8x128xf32>
    %117 = math.tanh %116 : vector<8x128xf32>
    %cst_30 = arith.constant 1.000000e+00 : f32
    %118 = vector.broadcast %cst_30 : f32 to vector<8x128xf32>
    %119 = arith.subf %118, %110 : vector<8x128xf32>
    %120 = arith.mulf %119, %117 : vector<8x128xf32>
    %121 = arith.mulf %110, %88 : vector<8x128xf32>
    %122 = arith.addf %120, %121 : vector<8x128xf32>
    %123 = vector.broadcast %c2_i32 : i32 to vector<8x1xi32>
    %124 = arith.cmpi slt, %123, %7 : vector<8x1xi32>
    %125 = vector.shape_cast %124 : vector<8x1xi1> to vector<8x1xi1>
    %126 = vector.broadcast %125 : vector<8x1xi1> to vector<8x128xi1>
    %127 = arith.select %126, %122, %88 : vector<8x128xi1>, vector<8x128xf32>
    %c3_i32 = arith.constant 3 : i32
    %c8_i32_31 = arith.constant 8 : i32
    %128 = arith.muli %c3_i32, %c8_i32_31 : i32
    %129 = tpu.assume_multiple %128, 8 : i32
    %130 = arith.index_cast %129 : i32 to index
    %c0_32 = arith.constant 0 : index
    %131 = vector.load %arg8[%130, %c0_32] : memref<64x384xf32, #tpu.memory_space<vmem>>, vector<8x384xf32>
    %132 = arith.truncf %127 : vector<8x128xf32> to vector<8x128xbf16>
    %cst_33 = arith.constant dense<0.000000e+00> : vector<8x384xf32>
    %133 = tpu.matmul %132, %8, %cst_33 {dimension_numbers = #tpu.dot_dimension_numbers<[1], [0], [0], [1], [0, 0, 1, 1], [], []>} : vector<8x128xbf16>, vector<128x384xbf16>, vector<8x384xf32> -> vector<8x384xf32>
    %134 = vector.extract_strided_slice %131 {offsets = [0, 0], sizes = [8, 128], strides = [1, 1]} : vector<8x384xf32> to vector<8x128xf32>
    %135 = vector.extract_strided_slice %133 {offsets = [0, 0], sizes = [8, 128], strides = [1, 1]} : vector<8x384xf32> to vector<8x128xf32>
    %136 = arith.addf %134, %135 : vector<8x128xf32>
    %137 = arith.negf %136 : vector<8x128xf32>
    %138 = math.exp %137 : vector<8x128xf32>
    %cst_34 = arith.constant 1.000000e+00 : f32
    %139 = vector.broadcast %cst_34 : f32 to vector<8x128xf32>
    %140 = arith.addf %139, %138 : vector<8x128xf32>
    %141 = arith.divf %139, %140 : vector<8x128xf32>
    %142 = vector.extract_strided_slice %131 {offsets = [0, 128], sizes = [8, 128], strides = [1, 1]} : vector<8x384xf32> to vector<8x128xf32>
    %143 = vector.extract_strided_slice %133 {offsets = [0, 128], sizes = [8, 128], strides = [1, 1]} : vector<8x384xf32> to vector<8x128xf32>
    %144 = arith.addf %142, %143 : vector<8x128xf32>
    %145 = arith.negf %144 : vector<8x128xf32>
    %146 = math.exp %145 : vector<8x128xf32>
    %cst_35 = arith.constant 1.000000e+00 : f32
    %147 = vector.broadcast %cst_35 : f32 to vector<8x128xf32>
    %148 = arith.addf %147, %146 : vector<8x128xf32>
    %149 = arith.divf %147, %148 : vector<8x128xf32>
    %150 = vector.extract_strided_slice %131 {offsets = [0, 256], sizes = [8, 128], strides = [1, 1]} : vector<8x384xf32> to vector<8x128xf32>
    %151 = vector.extract_strided_slice %133 {offsets = [0, 256], sizes = [8, 128], strides = [1, 1]} : vector<8x384xf32> to vector<8x128xf32>
    %152 = vector.broadcast %9 : vector<1x128xf32> to vector<8x128xf32>
    %153 = arith.addf %151, %152 : vector<8x128xf32>
    %154 = arith.mulf %141, %153 : vector<8x128xf32>
    %155 = arith.addf %150, %154 : vector<8x128xf32>
    %156 = math.tanh %155 : vector<8x128xf32>
    %cst_36 = arith.constant 1.000000e+00 : f32
    %157 = vector.broadcast %cst_36 : f32 to vector<8x128xf32>
    %158 = arith.subf %157, %149 : vector<8x128xf32>
    %159 = arith.mulf %158, %156 : vector<8x128xf32>
    %160 = arith.mulf %149, %127 : vector<8x128xf32>
    %161 = arith.addf %159, %160 : vector<8x128xf32>
    %162 = vector.broadcast %c3_i32 : i32 to vector<8x1xi32>
    %163 = arith.cmpi slt, %162, %7 : vector<8x1xi32>
    %164 = vector.shape_cast %163 : vector<8x1xi1> to vector<8x1xi1>
    %165 = vector.broadcast %164 : vector<8x1xi1> to vector<8x128xi1>
    %166 = arith.select %165, %161, %127 : vector<8x128xi1>, vector<8x128xf32>
    %c4_i32 = arith.constant 4 : i32
    %c8_i32_37 = arith.constant 8 : i32
    %167 = arith.muli %c4_i32, %c8_i32_37 : i32
    %168 = tpu.assume_multiple %167, 8 : i32
    %169 = arith.index_cast %168 : i32 to index
    %c0_38 = arith.constant 0 : index
    %170 = vector.load %arg8[%169, %c0_38] : memref<64x384xf32, #tpu.memory_space<vmem>>, vector<8x384xf32>
    %171 = arith.truncf %166 : vector<8x128xf32> to vector<8x128xbf16>
    %cst_39 = arith.constant dense<0.000000e+00> : vector<8x384xf32>
    %172 = tpu.matmul %171, %8, %cst_39 {dimension_numbers = #tpu.dot_dimension_numbers<[1], [0], [0], [1], [0, 0, 1, 1], [], []>} : vector<8x128xbf16>, vector<128x384xbf16>, vector<8x384xf32> -> vector<8x384xf32>
    %173 = vector.extract_strided_slice %170 {offsets = [0, 0], sizes = [8, 128], strides = [1, 1]} : vector<8x384xf32> to vector<8x128xf32>
    %174 = vector.extract_strided_slice %172 {offsets = [0, 0], sizes = [8, 128], strides = [1, 1]} : vector<8x384xf32> to vector<8x128xf32>
    %175 = arith.addf %173, %174 : vector<8x128xf32>
    %176 = arith.negf %175 : vector<8x128xf32>
    %177 = math.exp %176 : vector<8x128xf32>
    %cst_40 = arith.constant 1.000000e+00 : f32
    %178 = vector.broadcast %cst_40 : f32 to vector<8x128xf32>
    %179 = arith.addf %178, %177 : vector<8x128xf32>
    %180 = arith.divf %178, %179 : vector<8x128xf32>
    %181 = vector.extract_strided_slice %170 {offsets = [0, 128], sizes = [8, 128], strides = [1, 1]} : vector<8x384xf32> to vector<8x128xf32>
    %182 = vector.extract_strided_slice %172 {offsets = [0, 128], sizes = [8, 128], strides = [1, 1]} : vector<8x384xf32> to vector<8x128xf32>
    %183 = arith.addf %181, %182 : vector<8x128xf32>
    %184 = arith.negf %183 : vector<8x128xf32>
    %185 = math.exp %184 : vector<8x128xf32>
    %cst_41 = arith.constant 1.000000e+00 : f32
    %186 = vector.broadcast %cst_41 : f32 to vector<8x128xf32>
    %187 = arith.addf %186, %185 : vector<8x128xf32>
    %188 = arith.divf %186, %187 : vector<8x128xf32>
    %189 = vector.extract_strided_slice %170 {offsets = [0, 256], sizes = [8, 128], strides = [1, 1]} : vector<8x384xf32> to vector<8x128xf32>
    %190 = vector.extract_strided_slice %172 {offsets = [0, 256], sizes = [8, 128], strides = [1, 1]} : vector<8x384xf32> to vector<8x128xf32>
    %191 = vector.broadcast %9 : vector<1x128xf32> to vector<8x128xf32>
    %192 = arith.addf %190, %191 : vector<8x128xf32>
    %193 = arith.mulf %180, %192 : vector<8x128xf32>
    %194 = arith.addf %189, %193 : vector<8x128xf32>
    %195 = math.tanh %194 : vector<8x128xf32>
    %cst_42 = arith.constant 1.000000e+00 : f32
    %196 = vector.broadcast %cst_42 : f32 to vector<8x128xf32>
    %197 = arith.subf %196, %188 : vector<8x128xf32>
    %198 = arith.mulf %197, %195 : vector<8x128xf32>
    %199 = arith.mulf %188, %166 : vector<8x128xf32>
    %200 = arith.addf %198, %199 : vector<8x128xf32>
    %201 = vector.broadcast %c4_i32 : i32 to vector<8x1xi32>
    %202 = arith.cmpi slt, %201, %7 : vector<8x1xi32>
    %203 = vector.shape_cast %202 : vector<8x1xi1> to vector<8x1xi1>
    %204 = vector.broadcast %203 : vector<8x1xi1> to vector<8x128xi1>
    %205 = arith.select %204, %200, %166 : vector<8x128xi1>, vector<8x128xf32>
    %c5_i32 = arith.constant 5 : i32
    %c8_i32_43 = arith.constant 8 : i32
    %206 = arith.muli %c5_i32, %c8_i32_43 : i32
    %207 = tpu.assume_multiple %206, 8 : i32
    %208 = arith.index_cast %207 : i32 to index
    %c0_44 = arith.constant 0 : index
    %209 = vector.load %arg8[%208, %c0_44] : memref<64x384xf32, #tpu.memory_space<vmem>>, vector<8x384xf32>
    %210 = arith.truncf %205 : vector<8x128xf32> to vector<8x128xbf16>
    %cst_45 = arith.constant dense<0.000000e+00> : vector<8x384xf32>
    %211 = tpu.matmul %210, %8, %cst_45 {dimension_numbers = #tpu.dot_dimension_numbers<[1], [0], [0], [1], [0, 0, 1, 1], [], []>} : vector<8x128xbf16>, vector<128x384xbf16>, vector<8x384xf32> -> vector<8x384xf32>
    %212 = vector.extract_strided_slice %209 {offsets = [0, 0], sizes = [8, 128], strides = [1, 1]} : vector<8x384xf32> to vector<8x128xf32>
    %213 = vector.extract_strided_slice %211 {offsets = [0, 0], sizes = [8, 128], strides = [1, 1]} : vector<8x384xf32> to vector<8x128xf32>
    %214 = arith.addf %212, %213 : vector<8x128xf32>
    %215 = arith.negf %214 : vector<8x128xf32>
    %216 = math.exp %215 : vector<8x128xf32>
    %cst_46 = arith.constant 1.000000e+00 : f32
    %217 = vector.broadcast %cst_46 : f32 to vector<8x128xf32>
    %218 = arith.addf %217, %216 : vector<8x128xf32>
    %219 = arith.divf %217, %218 : vector<8x128xf32>
    %220 = vector.extract_strided_slice %209 {offsets = [0, 128], sizes = [8, 128], strides = [1, 1]} : vector<8x384xf32> to vector<8x128xf32>
    %221 = vector.extract_strided_slice %211 {offsets = [0, 128], sizes = [8, 128], strides = [1, 1]} : vector<8x384xf32> to vector<8x128xf32>
    %222 = arith.addf %220, %221 : vector<8x128xf32>
    %223 = arith.negf %222 : vector<8x128xf32>
    %224 = math.exp %223 : vector<8x128xf32>
    %cst_47 = arith.constant 1.000000e+00 : f32
    %225 = vector.broadcast %cst_47 : f32 to vector<8x128xf32>
    %226 = arith.addf %225, %224 : vector<8x128xf32>
    %227 = arith.divf %225, %226 : vector<8x128xf32>
    %228 = vector.extract_strided_slice %209 {offsets = [0, 256], sizes = [8, 128], strides = [1, 1]} : vector<8x384xf32> to vector<8x128xf32>
    %229 = vector.extract_strided_slice %211 {offsets = [0, 256], sizes = [8, 128], strides = [1, 1]} : vector<8x384xf32> to vector<8x128xf32>
    %230 = vector.broadcast %9 : vector<1x128xf32> to vector<8x128xf32>
    %231 = arith.addf %229, %230 : vector<8x128xf32>
    %232 = arith.mulf %219, %231 : vector<8x128xf32>
    %233 = arith.addf %228, %232 : vector<8x128xf32>
    %234 = math.tanh %233 : vector<8x128xf32>
    %cst_48 = arith.constant 1.000000e+00 : f32
    %235 = vector.broadcast %cst_48 : f32 to vector<8x128xf32>
    %236 = arith.subf %235, %227 : vector<8x128xf32>
    %237 = arith.mulf %236, %234 : vector<8x128xf32>
    %238 = arith.mulf %227, %205 : vector<8x128xf32>
    %239 = arith.addf %237, %238 : vector<8x128xf32>
    %240 = vector.broadcast %c5_i32 : i32 to vector<8x1xi32>
    %241 = arith.cmpi slt, %240, %7 : vector<8x1xi32>
    %242 = vector.shape_cast %241 : vector<8x1xi1> to vector<8x1xi1>
    %243 = vector.broadcast %242 : vector<8x1xi1> to vector<8x128xi1>
    %244 = arith.select %243, %239, %205 : vector<8x128xi1>, vector<8x128xf32>
    %c6_i32 = arith.constant 6 : i32
    %c8_i32_49 = arith.constant 8 : i32
    %245 = arith.muli %c6_i32, %c8_i32_49 : i32
    %246 = tpu.assume_multiple %245, 8 : i32
    %247 = arith.index_cast %246 : i32 to index
    %c0_50 = arith.constant 0 : index
    %248 = vector.load %arg8[%247, %c0_50] : memref<64x384xf32, #tpu.memory_space<vmem>>, vector<8x384xf32>
    %249 = arith.truncf %244 : vector<8x128xf32> to vector<8x128xbf16>
    %cst_51 = arith.constant dense<0.000000e+00> : vector<8x384xf32>
    %250 = tpu.matmul %249, %8, %cst_51 {dimension_numbers = #tpu.dot_dimension_numbers<[1], [0], [0], [1], [0, 0, 1, 1], [], []>} : vector<8x128xbf16>, vector<128x384xbf16>, vector<8x384xf32> -> vector<8x384xf32>
    %251 = vector.extract_strided_slice %248 {offsets = [0, 0], sizes = [8, 128], strides = [1, 1]} : vector<8x384xf32> to vector<8x128xf32>
    %252 = vector.extract_strided_slice %250 {offsets = [0, 0], sizes = [8, 128], strides = [1, 1]} : vector<8x384xf32> to vector<8x128xf32>
    %253 = arith.addf %251, %252 : vector<8x128xf32>
    %254 = arith.negf %253 : vector<8x128xf32>
    %255 = math.exp %254 : vector<8x128xf32>
    %cst_52 = arith.constant 1.000000e+00 : f32
    %256 = vector.broadcast %cst_52 : f32 to vector<8x128xf32>
    %257 = arith.addf %256, %255 : vector<8x128xf32>
    %258 = arith.divf %256, %257 : vector<8x128xf32>
    %259 = vector.extract_strided_slice %248 {offsets = [0, 128], sizes = [8, 128], strides = [1, 1]} : vector<8x384xf32> to vector<8x128xf32>
    %260 = vector.extract_strided_slice %250 {offsets = [0, 128], sizes = [8, 128], strides = [1, 1]} : vector<8x384xf32> to vector<8x128xf32>
    %261 = arith.addf %259, %260 : vector<8x128xf32>
    %262 = arith.negf %261 : vector<8x128xf32>
    %263 = math.exp %262 : vector<8x128xf32>
    %cst_53 = arith.constant 1.000000e+00 : f32
    %264 = vector.broadcast %cst_53 : f32 to vector<8x128xf32>
    %265 = arith.addf %264, %263 : vector<8x128xf32>
    %266 = arith.divf %264, %265 : vector<8x128xf32>
    %267 = vector.extract_strided_slice %248 {offsets = [0, 256], sizes = [8, 128], strides = [1, 1]} : vector<8x384xf32> to vector<8x128xf32>
    %268 = vector.extract_strided_slice %250 {offsets = [0, 256], sizes = [8, 128], strides = [1, 1]} : vector<8x384xf32> to vector<8x128xf32>
    %269 = vector.broadcast %9 : vector<1x128xf32> to vector<8x128xf32>
    %270 = arith.addf %268, %269 : vector<8x128xf32>
    %271 = arith.mulf %258, %270 : vector<8x128xf32>
    %272 = arith.addf %267, %271 : vector<8x128xf32>
    %273 = math.tanh %272 : vector<8x128xf32>
    %cst_54 = arith.constant 1.000000e+00 : f32
    %274 = vector.broadcast %cst_54 : f32 to vector<8x128xf32>
    %275 = arith.subf %274, %266 : vector<8x128xf32>
    %276 = arith.mulf %275, %273 : vector<8x128xf32>
    %277 = arith.mulf %266, %244 : vector<8x128xf32>
    %278 = arith.addf %276, %277 : vector<8x128xf32>
    %279 = vector.broadcast %c6_i32 : i32 to vector<8x1xi32>
    %280 = arith.cmpi slt, %279, %7 : vector<8x1xi32>
    %281 = vector.shape_cast %280 : vector<8x1xi1> to vector<8x1xi1>
    %282 = vector.broadcast %281 : vector<8x1xi1> to vector<8x128xi1>
    %283 = arith.select %282, %278, %244 : vector<8x128xi1>, vector<8x128xf32>
    %c7_i32 = arith.constant 7 : i32
    %c8_i32_55 = arith.constant 8 : i32
    %284 = arith.muli %c7_i32, %c8_i32_55 : i32
    %285 = tpu.assume_multiple %284, 8 : i32
    %286 = arith.index_cast %285 : i32 to index
    %c0_56 = arith.constant 0 : index
    %287 = vector.load %arg8[%286, %c0_56] : memref<64x384xf32, #tpu.memory_space<vmem>>, vector<8x384xf32>
    %288 = arith.truncf %283 : vector<8x128xf32> to vector<8x128xbf16>
    %cst_57 = arith.constant dense<0.000000e+00> : vector<8x384xf32>
    %289 = tpu.matmul %288, %8, %cst_57 {dimension_numbers = #tpu.dot_dimension_numbers<[1], [0], [0], [1], [0, 0, 1, 1], [], []>} : vector<8x128xbf16>, vector<128x384xbf16>, vector<8x384xf32> -> vector<8x384xf32>
    %290 = vector.extract_strided_slice %287 {offsets = [0, 0], sizes = [8, 128], strides = [1, 1]} : vector<8x384xf32> to vector<8x128xf32>
    %291 = vector.extract_strided_slice %289 {offsets = [0, 0], sizes = [8, 128], strides = [1, 1]} : vector<8x384xf32> to vector<8x128xf32>
    %292 = arith.addf %290, %291 : vector<8x128xf32>
    %293 = arith.negf %292 : vector<8x128xf32>
    %294 = math.exp %293 : vector<8x128xf32>
    %cst_58 = arith.constant 1.000000e+00 : f32
    %295 = vector.broadcast %cst_58 : f32 to vector<8x128xf32>
    %296 = arith.addf %295, %294 : vector<8x128xf32>
    %297 = arith.divf %295, %296 : vector<8x128xf32>
    %298 = vector.extract_strided_slice %287 {offsets = [0, 128], sizes = [8, 128], strides = [1, 1]} : vector<8x384xf32> to vector<8x128xf32>
    %299 = vector.extract_strided_slice %289 {offsets = [0, 128], sizes = [8, 128], strides = [1, 1]} : vector<8x384xf32> to vector<8x128xf32>
    %300 = arith.addf %298, %299 : vector<8x128xf32>
    %301 = arith.negf %300 : vector<8x128xf32>
    %302 = math.exp %301 : vector<8x128xf32>
    %cst_59 = arith.constant 1.000000e+00 : f32
    %303 = vector.broadcast %cst_59 : f32 to vector<8x128xf32>
    %304 = arith.addf %303, %302 : vector<8x128xf32>
    %305 = arith.divf %303, %304 : vector<8x128xf32>
    %306 = vector.extract_strided_slice %287 {offsets = [0, 256], sizes = [8, 128], strides = [1, 1]} : vector<8x384xf32> to vector<8x128xf32>
    %307 = vector.extract_strided_slice %289 {offsets = [0, 256], sizes = [8, 128], strides = [1, 1]} : vector<8x384xf32> to vector<8x128xf32>
    %308 = vector.broadcast %9 : vector<1x128xf32> to vector<8x128xf32>
    %309 = arith.addf %307, %308 : vector<8x128xf32>
    %310 = arith.mulf %297, %309 : vector<8x128xf32>
    %311 = arith.addf %306, %310 : vector<8x128xf32>
    %312 = math.tanh %311 : vector<8x128xf32>
    %cst_60 = arith.constant 1.000000e+00 : f32
    %313 = vector.broadcast %cst_60 : f32 to vector<8x128xf32>
    %314 = arith.subf %313, %305 : vector<8x128xf32>
    %315 = arith.mulf %314, %312 : vector<8x128xf32>
    %316 = arith.mulf %305, %283 : vector<8x128xf32>
    %317 = arith.addf %315, %316 : vector<8x128xf32>
    %318 = vector.broadcast %c7_i32 : i32 to vector<8x1xi32>
    %319 = arith.cmpi slt, %318, %7 : vector<8x1xi32>
    %320 = vector.shape_cast %319 : vector<8x1xi1> to vector<8x1xi1>
    %321 = vector.broadcast %320 : vector<8x1xi1> to vector<8x128xi1>
    %322 = arith.select %321, %317, %283 : vector<8x128xi1>, vector<8x128xf32>
    %c8_i32_61 = arith.constant 8 : i32
    %c0_62 = arith.constant 0 : index
    %c0_63 = arith.constant 0 : index
    %323 = vector.load %arg7[%c0_62, %c0_63] : memref<8x128xf32, #tpu.memory_space<vmem>>, vector<8x128xf32>
    tpu.vector_store %arg7[%c0_62, %c0_63], %322 {strides = array<i32>} : memref<8x128xf32, #tpu.memory_space<vmem>>, vector<8x128xf32>,
    return
  }
  func.func @transform_0(%arg0: i32) -> (i32, i32) {
    %c0_i32 = arith.constant 0 : i32
    %c0_i32_0 = arith.constant 0 : i32
    %c0_i32_1 = arith.constant 0 : i32
    return %c0_i32, %c0_i32_0 : i32, i32
  }
  func.func @transform_1(%arg0: i32) -> (i32, i32) {
    %c0_i32 = arith.constant 0 : i32
    %c0_i32_0 = arith.constant 0 : i32
    %c0_i32_1 = arith.constant 0 : i32
    return %c0_i32, %c0_i32_0 : i32, i32
  }
  func.func @transform_2(%arg0: i32) -> (i32, i32) {
    %c0_i32 = arith.constant 0 : i32
    %c0_i32_0 = arith.constant 0 : i32
    %c0_i32_1 = arith.constant 0 : i32
    return %c0_i32, %c0_i32_0 : i32, i32
  }
  func.func @transform_3(%arg0: i32) -> (i32, i32) {
    %c0_i32 = arith.constant 0 : i32
    %c0_i32_0 = arith.constant 0 : i32
    %c0_i32_1 = arith.constant 0 : i32
    return %c0_i32, %c0_i32_0 : i32, i32
  }
  func.func @transform_4(%arg0: i32) -> (i32, i32) {
    %c0_i32 = arith.constant 0 : i32
    %c0_i32_0 = arith.constant 0 : i32
    %c0_i32_1 = arith.constant 0 : i32
    return %c0_i32, %c0_i32_0 : i32, i32
  }
  func.func @transform_5(%arg0: i32) -> (i32, i32) {
    %c0_i32 = arith.constant 0 : i32
    %c0_i32_0 = arith.constant 0 : i32
    %c0_i32_1 = arith.constant 0 : i32
    return %c0_i32, %c0_i32_0 : i32, i32
  }
  func.func @transform_6(%arg0: i32) -> (i32, i32) {
    %c0_i32 = arith.constant 0 : i32
    %c0_i32_0 = arith.constant 0 : i32
    %c0_i32_1 = arith.constant 0 : i32
    return %c0_i32, %c0_i32_0 : i32, i32
  }
}

</mosaic_0001>

<bundles_post_ra>
// kernel: tpu_custom_call.1
= control target key start
LH: loop header
LB: loop body
LE: loop exit
PB: predicated region body
PF: predicated region fallthrough
CT: control target
= control target key end

     0   :  { %11 = vsyncpa [#allocation4], 0  ;;  %s2769_s0 = inlined_call_operand.hbm [shape: bf16[64,128], index: 0, kind: input, shape index: {}]   ;;  %s2770_s1 = inlined_call_operand.vmem [shape: s32[8,1], index: 1, kind: input, shape index: {}]   ;;  %s2771_s2 = inlined_call_operand.hbm [shape: bf16[128,384], index: 2, kind: input, shape index: {}]   ;;  %s2772_s3 = inlined_call_operand.hbm [shape: bf16[128,384], index: 3, kind: input, shape index: {}]   ;;  %s2773_s4 = inlined_call_operand.vmem [shape: f32[1,384], index: 4, kind: input, shape index: {}]   ;;  %s2774_s5 = inlined_call_operand.vmem [shape: f32[1,128], index: 5, kind: input, shape index: {}]   ;;  %s2775_s6 = inlined_call_operand.hbm [shape: f32[8,128], index: 6, kind: output, shape index: {}]  }
   0x1   :  { %12 = vsyncpa [#allocation7], 0 }
   0x2   :  { %13 = vsyncpa [#allocation5], 0  ;;  %s2186_s21 = smov [#allocation6]   ;;  %s2092_s25 = scalar_lea.hbm %s2771_s2, 3072 }
   0x3   :  { %s33_s22 = sshll.u32 %s2186_s21, 4  ;;  %p2093_p0 = scmp.ne.s32.totalorder %s2771_s2, %s2092_s25  ;;  %s34_s22 = int_to_ptr.vmem [resolvable:$true] %s33_s22 }
   0x4   :  { %p2096_p1 = scmp.lt.u32.totalorder %s2092_s25, %s2771_s2 }
   0x6   :  { %p2098_p2 = pnand %p2096_p1, %p2093_p0 }
   0x8   :  { %2101 = shalt.err (!%p2098_p2)
}
   0x9   :  { %s2102_s30 = scalar_lea.vmem %s34_s22, 3072  ;;  %p2107_p4 = scmp.lt.s32.totalorder %s34_s22, %s34_s22 }
   0xa   :  { %p2103_p3 = scmp.ne.s32.totalorder %s34_s22, %s2102_s30  ;;  %p2108_p5 = scmp.lt.s32.totalorder %s2102_s30, %s2102_s30 }
   0xc   :  { %p2109_p6 = por %p2108_p5, %p2107_p4 }
   0xe   :  { %p2110_p7 = pnand %p2109_p6, %p2103_p3 }
  0x10   :  { %2113 = shalt.err (!%p2110_p7)
}
  0x11   :  { %s2187_s7 = smov 192   ;;  %s2188_s8 = smov 12  }
  0x12   :  { %39 = dma.hbm_to_vmem [thread:$0]  %s2771_s2, 3072, %s34_s22, [#allocation7], %s2187_s7, %s2187_s7, %s2188_s8  }
  0x13   :  { %s2189_s11 = smov [#allocation3]   ;;  %s2114_s15 = scalar_lea.hbm %s2769_s0, 512 }
  0x14   :  { %s19_s12 = sshll.u32 %s2189_s11, 4  ;;  %p2115_p8 = scmp.ne.s32.totalorder %s2769_s0, %s2114_s15  ;;  %s20_s12 = int_to_ptr.vmem [resolvable:$true] %s19_s12 }
  0x15   :  { %p2118_p9 = scmp.lt.u32.totalorder %s2114_s15, %s2769_s0 }
  0x17   :  { %p2120_p10 = pnand %p2118_p9, %p2115_p8 }
  0x19   :  { %2123 = shalt.err (!%p2120_p10)
}
  0x1a   :  { %s2124_s20 = scalar_lea.vmem %s20_s12, 512  ;;  %p2129_p12 = scmp.lt.s32.totalorder %s20_s12, %s20_s12 }
  0x1b   :  { %p2125_p11 = scmp.ne.s32.totalorder %s20_s12, %s2124_s20  ;;  %p2130_p13 = scmp.lt.s32.totalorder %s2124_s20, %s2124_s20 }
  0x1d   :  { %p2131_p0 = por %p2130_p13, %p2129_p12 }
  0x1f   :  { %p2132_p1 = pnand %p2131_p0, %p2125_p11 }
  0x21   :  { %2135 = shalt.err (!%p2132_p1)
}
  0x22   :  { %s2190_s2 = smov 64   ;;  %s2191_s21 = smov 4  }
  0x23   :  { %25 = dma.hbm_to_vmem [thread:$0]  %s2769_s0, 512, %s20_s12, [#allocation4], %s2190_s2, %s2190_s2, %s2191_s21  }
  0x24   :  { %s2192_s24 = smov [#allocation8]   ;;  %s2136_s28 = scalar_lea.hbm %s2772_s3, 3072 }
  0x25   :  { %s45_s25 = sshll.u32 %s2192_s24, 4  ;;  %p2137_p2 = scmp.ne.s32.totalorder %s2772_s3, %s2136_s28  ;;  %s46_s25 = int_to_ptr.vmem [resolvable:$true] %s45_s25 }
  0x26   :  { %p2140_p3 = scmp.lt.u32.totalorder %s2136_s28, %s2772_s3 }
  0x28   :  { %p2142_p4 = pnand %p2140_p3, %p2137_p2 }
  0x2a   :  { %2145 = shalt.err (!%p2142_p4)
}
  0x2b   :  { %s2146_s11 = scalar_lea.vmem %s46_s25, 3072  ;;  %p2151_p6 = scmp.lt.s32.totalorder %s46_s25, %s46_s25 }
  0x2c   :  { %p2147_p5 = scmp.ne.s32.totalorder %s46_s25, %s2146_s11  ;;  %p2152_p7 = scmp.lt.s32.totalorder %s2146_s11, %s2146_s11 }
  0x2e   :  { %p2153_p8 = por %p2152_p7, %p2151_p6 }
  0x30   :  { %p2154_p9 = pnand %p2153_p8, %p2147_p5 }
  0x32   :  { %2157 = shalt.err (!%p2154_p9)
}
  0x33   :  { %51 = dma.hbm_to_vmem [thread:$0]  %s2772_s3, 3072, %s46_s25, [#allocation7], %s2187_s7, %s2187_s7, %s2188_s8  }
  0x34   :  { %2180 = dma.done.wait [#allocation4], 512  }
  0x35   :  { %2181 = vsyncadd [#allocation4], 4294966784 }
  0x36   :  { %2182 = dma.done.wait [#allocation7], 6144  }
  0x37   :  { %2183 = vsyncadd [#allocation7], 4294961152  ;;  %v2776_v0 = vmov 0   ;;  %v1920_v1 = vld [vmem:[#allocation6 + $0x4] ss:$12 sps:$4 sm:$0xff]   ;;  %v1955_v31 = vld [vmem:[#allocation3 + $0x8] sm:$0xff]   ;;  %v108_v59 = vlaneseq }
  0x38   :  { %307 = vmatprep.mubr.bf16.mxu0 %v2776_v0  ;;  %1918 = vset.pattern.permute.xlu0 %v2776_v0  ;;  %v1922_v2 = vld [vmem:[#allocation6] ss:$12 sps:$4 sm:$0xff]   ;;  %v1923_v3 = vld [vmem:[#allocation6 + $0x1c] ss:$12 sps:$4 sm:$0xff]   ;;  %v1925_v4 = vld [vmem:[#allocation6 + $0x18] ss:$12 sps:$4 sm:$0xff]  }
  0x39   :  { %1919 = vset.pattern.permute.xlu1 %v2776_v0  ;;  %275 = vmatprep.subr.bf16.mxu0 %v1920_v1  ;;  %v1926_v5 = vld [vmem:[#allocation6 + $0x34] ss:$12 sps:$4 sm:$0xff]   ;;  %v1928_v6 = vld [vmem:[#allocation6 + $0x30] ss:$12 sps:$4 sm:$0xff]   ;;  %v1929_v7 = vld [vmem:[#allocation6 + $0x4c] ss:$12 sps:$4 sm:$0xff]  }
  0x3a   :  { %276 = vmatpush1.bf16.msra.mxu0 %v1922_v2  ;;  %v1940_v8 = vld [vmem:[#allocation6 + $0x8] ss:$12 sps:$4 sm:$0xff]   ;;  %v1932_v10 = vld [vmem:[#allocation6 + $0x64] ss:$12 sps:$4 sm:$0xff]   ;;  %v1944_v11 = vld [vmem:[#allocation6 + $0x20] ss:$12 sps:$4 sm:$0xff]  }
  0x3b   :  { %277 = vmatprep.subr.bf16.mxu0 %v1923_v3  ;;  %v1931_v9 = vld [vmem:[#allocation6 + $0x48] ss:$12 sps:$4 sm:$0xff]   ;;  %1723 = vmatprep.subr.bf16.mxu1 %v1940_v8  ;;  %v1946_v12 = vld [vmem:[#allocation3] sm:$0xff]   ;;  %v1951_v16 = vld [vmem:[#allocation6 + $0x50] ss:$12 sps:$4 sm:$0xff]   ;;  %v2778_v34 = vmov 0.0  }
  0x3c   :  { %1724 = vmatpush3.bf16.msra.mxu1 %v1940_v8  ;;  %v1947_v13 = vld [vmem:[#allocation6 + $0x38] ss:$12 sps:$4 sm:$0xff]   ;;  %v1934_v14 = vld [vmem:[#allocation6 + $0x60] ss:$12 sps:$4 sm:$0xff]   ;;  %1739 = vmatprep.mubr.bf16.mxu1 %v1946_v12  ;;  %v1935_v15 = vld [vmem:[#allocation6 + $0x7c] ss:$12 sps:$4 sm:$0xff]  }
  0x3d   :  { %1725 = vmatprep.subr.bf16.mxu1 %v1944_v11  ;;  %v1937_v17 = vld [vmem:[#allocation6 + $0x78] ss:$12 sps:$4 sm:$0xff]   ;;  %v1938_v18 = vld [vmem:[#allocation6 + $0x94] ss:$12 sps:$4 sm:$0xff]   ;;  %v1941_v20 = vld [vmem:[#allocation6 + $0x90] ss:$12 sps:$4 sm:$0xff]  }
  0x3e   :  { %278 = vmatpush1.bf16.msra.mxu0 %v1925_v4  ;;  %v1956_v19 = vld [vmem:[#allocation6 + $0x68] ss:$12 sps:$4 sm:$0xff]   ;;  %v1942_v21 = vld [vmem:[#allocation6 + $0xac] ss:$12 sps:$4 sm:$0xff]   ;;  %v2277_v24 = vld [vmem:[#allocation8 + $0x4] ss:$12 sps:$4 sm:$0xff]  }
  0x3f   :  { %279 = vmatprep.subr.bf16.mxu0 %v1926_v5  ;;  %v1960_v22 = vld [vmem:[#allocation6 + $0x80] ss:$12 sps:$4 sm:$0xff]   ;;  %v1945_v23 = vld [vmem:[#allocation6 + $0xa8] ss:$12 sps:$4 sm:$0xff]   ;;  %v1965_v25 = vld [vmem:[#allocation6 + $0x98] ss:$12 sps:$4 sm:$0xff]  }
  0x40   :  { %1726 = vmatpush3.bf16.msra.mxu1 %v1944_v11  ;;  %v2279_v26 = vld [vmem:[#allocation8] ss:$12 sps:$4 sm:$0xff]   ;;  %v2282_v27 = vld [vmem:[#allocation8 + $0x1c] ss:$12 sps:$4 sm:$0xff]   ;;  %v2285_v29 = vld [vmem:[#allocation8 + $0x18] ss:$12 sps:$4 sm:$0xff]  }
  0x41   :  { %1727 = vmatprep.subr.bf16.mxu1 %v1947_v13  ;;  %v1969_v28 = vld [vmem:[#allocation6 + $0xb0] ss:$12 sps:$4 sm:$0xff]   ;;  %v2289_v30 = vld [vmem:[#allocation8 + $0x34] ss:$12 sps:$4 sm:$0xff]   ;;  %v2295_v33 = vld [vmem:[#allocation8 + $0x4c] ss:$12 sps:$4 sm:$0xff]  }
  0x42   :  { %280 = vmatpush1.bf16.msra.mxu0 %v1928_v6  ;;  %v2292_v32 = vld [vmem:[#allocation8 + $0x30] ss:$12 sps:$4 sm:$0xff]   ;;  %v2298_v35 = vld [vmem:[#allocation8 + $0x8] ss:$12 sps:$4 sm:$0xff]   ;;  %v2303_v36 = vld [vmem:[%s2770_s1] sm:$0xff]  ;;  %vm2195_vm2 = vmmov 0  }
  0x43   :  { %281 = vmatprep.subr.bf16.mxu0 %v1929_v7  ;;  %vm714_vm0 = vcmp.gt.s32.totalorder %v2303_v36, 0  ;;  %v2307_v37 = vld [vmem:[#allocation8 + $0x48] ss:$12 sps:$4 sm:$0xff]   ;;  %v2312_v40 = vld [vmem:[#allocation8 + $0x64] ss:$12 sps:$4 sm:$0xff]   ;;  %vm831_vm1 = vcmp.gt.s32.totalorder %v2303_v36, 1 }
  0x44   :  { %1728 = vmatpush3.bf16.msra.mxu1 %v1947_v13  ;;  %v1964_v38 = vld [vmem:[#allocation3 + $0x10] sm:$0xff]   ;;  %v715_v39 = vsel %vm714_vm0, 1, %v2776_v0  ;;  %v2315_v41 = vld [vmem:[#allocation8 + $0x20] ss:$12 sps:$4 sm:$0xff]   ;;  %v2322_v43 = vld [vmem:[#allocation8 + $0x7c] ss:$12 sps:$4 sm:$0xff]  }
  0x45   :  { %1729 = vmatprep.subr.bf16.mxu1 %v1951_v16  ;;  %717 = vperm.xlu0 %1918, %v715_v39   ;;  %v2319_v42 = vld [vmem:[#allocation8 + $0x60] ss:$12 sps:$4 sm:$0xff]   ;;  %v2326_v44 = vld [vmem:[#allocation8 + $0x38] ss:$12 sps:$4 sm:$0xff]   ;;  %v832_v47 = vsel %vm831_vm1, 1, %v2776_v0  ;;  %vm1182_vm3 = vcmp.gt.s32.totalorder %v2303_v36, 4 }
  0x46   :  { %282 = vmatpush1.bf16.msra.mxu0 %v1931_v9  ;;  %v1973_v45 = vld [vmem:[#allocation3 + $0x18] sm:$0xff]   ;;  %v2335_v48 = vld [vmem:[#allocation8 + $0x94] ss:$12 sps:$4 sm:$0xff]   ;;  %v1183_v53 = vsel %vm1182_vm3, 1, %v2776_v0  ;;  %vm1416_vm4 = vcmp.gt.s32.totalorder %v2303_v36, 6  ;;  %v109_v60 = vshrl.u32 %v108_v59, 7 }
  0x47   :  { %283 = vmatprep.subr.bf16.mxu0 %v1932_v10  ;;  %v2330_v46 = vld [vmem:[#allocation8 + $0x78] ss:$12 sps:$4 sm:$0xff]   ;;  %v2338_v49 = vld [vmem:[#allocation8 + $0x50] ss:$12 sps:$4 sm:$0xff]   ;;  %v2351_v52 = vld [vmem:[#allocation8 + $0x68] ss:$12 sps:$4 sm:$0xff]  }
  0x48   :  { %1730 = vmatpush3.bf16.msra.mxu1 %v1951_v16  ;;  %v2345_v50 = vld [vmem:[#allocation8 + $0x90] ss:$12 sps:$4 sm:$0xff]   ;;  %v2348_v51 = vld [vmem:[#allocation8 + $0xac] ss:$12 sps:$4 sm:$0xff]   ;;  %v2357_v54 = vld [vmem:[#allocation8 + $0xa8] ss:$12 sps:$4 sm:$0xff]  }
  0x49   :  { %1731 = vmatprep.subr.bf16.mxu1 %v1956_v19  ;;  %834 = vperm.xlu0 %1918, %v832_v47   ;;  %v2362_v55 = vld [vmem:[#allocation8 + $0x80] ss:$12 sps:$4 sm:$0xff]   ;;  %v1417_v56 = vsel %vm1416_vm4, 1, %v2776_v0  ;;  %v2369_v57 = vld [vmem:[#allocation8 + $0x98] ss:$12 sps:$4 sm:$0xff]   ;;  %v110_v61 = vsub.s32 0, %v109_v60 }
  0x4a   :  { %284 = vmatpush1.bf16.msra.mxu0 %v1934_v14  ;;  %v2377_v58 = vld [vmem:[#allocation8 + $0xb0] ss:$12 sps:$4 sm:$0xff]   ;;  %v106_v62 = vld [vmem:[%s2773_s4] sm:$0x7]  ;;  %v114_v63 = vsub.s32 1, %v109_v60  ;;  %v118_v8 = vsub.s32 2, %v109_v60 }
  0x4b   :  { %285 = vmatprep.subr.bf16.mxu0 %v1935_v15  ;;  %v111_v2 = vrot.slane %v106_v62, %v110_v61  ;;  %vm948_vm7 = vcmp.gt.s32.totalorder %v2303_v36, 2  ;;  %vm1065_vm8 = vcmp.gt.s32.totalorder %v2303_v36, 3  ;;  %vm1299_vm9 = vcmp.gt.s32.totalorder %v2303_v36, 5 }
  0x4c   :  { %1732 = vmatpush3.bf16.msra.mxu1 %v1956_v19  ;;  %v115_v4 = vrot.slane %v106_v62, %v114_v63  ;;  %v2422_v10 = vrot.slane %v106_v62, %v118_v8  ;;  %vm1533_vm10 = vcmp.gt.s32.totalorder %v2303_v36, 7 }
  0x4d   :  { %1733 = vmatprep.subr.bf16.mxu1 %v1960_v22  ;;  %1185 = vperm.xlu0 %1918, %v1183_v53  }
  0x4e   :  { %286 = vmatpush1.bf16.msra.mxu0 %v1937_v17 }
  0x4f   :  { %287 = vmatprep.subr.bf16.mxu0 %v1938_v18 }
  0x50   :  { %1734 = vmatpush3.bf16.msra.mxu1 %v1960_v22 }
  0x51   :  { %1735 = vmatprep.subr.bf16.mxu1 %v1965_v25  ;;  %1419 = vperm.xlu0 %1918, %v1417_v56  }
  0x52   :  { %288 = vmatpush1.bf16.msra.mxu0 %v1941_v20 }
  0x53   :  { %289 = vmatprep.subr.bf16.mxu0 %v1942_v21 }
  0x54   :  { %1736 = vmatpush3.bf16.msra.mxu1 %v1965_v25 }
  0x55   :  { %1737 = vmatprep.subr.bf16.mxu1 %v1969_v28 }
  0x56   :  { %290 = vmatpush1.bf16.msra.mxu0 %v1945_v23 }
  0x57   :  { %605 = vmatprep.subr.bf16.mxu0 %v2277_v24 }
  0x58   :  { %1738 = vmatpush3.bf16.msra.mxu1 %v1969_v28 }
  0x59   :  { %308 = vmatmul.mubr.bf16.vlgmr.msra.gmra.mrb[0].mxu0 %v1946_v12  ;;  %1747 = vmatprep.subr.bf16.mxu1 %v2778_v34 }
  0x5a   :  { %606 = vmatpush1.bf16.msra.mxu0 %v2279_v26  ;;  %317 = vmatprep.mubr.bf16.mxu0 %v2776_v0 }
  0x5b   :  { %607 = vmatprep.subr.bf16.mxu0 %v2282_v27  ;;  %1740 = vmatmul.mubr.bf16.vlgmr.msra.gmra.mrb[0].mxu1 %v1955_v31 }
  0x5c   :  { %1748 = vmatpush3.bf16.msra.mxu1 %v2298_v35  ;;  %1743 = vmatprep.mubr.bf16.mxu1 %v1964_v38 }
  0x5d   :  { %1749 = vmatprep.subr.bf16.mxu1 %v2778_v34 }
  0x5e   :  { %608 = vmatpush1.bf16.msra.mxu0 %v2285_v29 }
  0x5f   :  { %609 = vmatprep.subr.bf16.mxu0 %v2289_v30 }
  0x60   :  { %1750 = vmatpush3.bf16.msra.mxu1 %v2315_v41 }
  0x61   :  { %318 = vmatmul.mubr.bf16.gmra.mrb[4].mxu0 %v1955_v31  ;;  %1751 = vmatprep.subr.bf16.mxu1 %v2778_v34 }
  0x62   :  { %610 = vmatpush1.bf16.msra.mxu0 %v2292_v32  ;;  %327 = vmatprep.mubr.bf16.mxu0 %v2776_v0 }
  0x63   :  { %611 = vmatprep.subr.bf16.mxu0 %v2295_v33  ;;  %1744 = vmatmul.mubr.bf16.gmra.mrb[4].mxu1 %v1973_v45 }
  0x64   :  { %1752 = vmatpush3.bf16.msra.mxu1 %v2326_v44  ;;  %1763 = vmatprep.mubr.msk.bf16.mxu1 %vm2195_vm2, %v2778_v34 }
  0x65   :  { %1753 = vmatprep.subr.bf16.mxu1 %v2778_v34 }
  0x66   :  { %612 = vmatpush1.bf16.msra.mxu0 %v2307_v37 }
  0x67   :  { %613 = vmatprep.subr.bf16.mxu0 %v2312_v40 }
  0x68   :  { %1754 = vmatpush3.bf16.msra.mxu1 %v2338_v49 }
  0x69   :  { %328 = vmatmul.mubr.bf16.gmra.mrb[8].mxu0 %v1964_v38  ;;  %1755 = vmatprep.subr.bf16.mxu1 %v2778_v34 }
  0x6a   :  { %614 = vmatpush1.bf16.msra.mxu0 %v2319_v42  ;;  %337 = vmatprep.mubr.bf16.mxu0 %v2776_v0 }
  0x6b   :  { %615 = vmatprep.subr.bf16.mxu0 %v2322_v43 }
  0x6c   :  { %1756 = vmatpush3.bf16.msra.mxu1 %v2351_v52 }
  0x6d   :  { %1757 = vmatprep.subr.bf16.mxu1 %v2778_v34 }
  0x6e   :  { %616 = vmatpush1.bf16.msra.mxu0 %v2330_v46 }
  0x6f   :  { %617 = vmatprep.subr.bf16.mxu0 %v2335_v48 }
  0x70   :  { %1758 = vmatpush3.bf16.msra.mxu1 %v2362_v55 }
  0x71   :  { %338 = vmatmul.mubr.bf16.gmra.mrb[12].mxu0 %v1973_v45  ;;  %1759 = vmatprep.subr.bf16.mxu1 %v2778_v34 }
  0x72   :  { %618 = vmatpush1.bf16.msra.mxu0 %v2345_v50  ;;  %637 = vmatprep.mubr.bf16.mxu0 %v2776_v0 }
  0x73   :  { %619 = vmatprep.subr.bf16.mxu0 %v2348_v51 }
  0x74   :  { %1760 = vmatpush3.bf16.msra.mxu1 %v2369_v57 }
  0x75   :  { %1761 = vmatprep.subr.bf16.mxu1 %v2778_v34 }
  0x76   :  { %620 = vmatpush1.bf16.msra.mxu0 %v2357_v54 }
  0x77   :  { %728 = vmatprep.subr.bf16.mxu0 %v2277_v24 }
  0x78   :  { %1762 = vmatpush3.bf16.msra.mxu1 %v2377_v58 }
  0x79   :  { %638 = vmatmul.mubr.bf16.vlgmr.msra.gmra.mrb[16].mxu0 %v2776_v0  ;;  %1767 = vmatprep.subr.bf16.mxu1 %v2778_v34 }
  0x7a   :  { %729 = vmatpush1.bf16.msra.mxu0 %v2279_v26  ;;  %760 = vmatprep.mubr.bf16.mxu0 %v2776_v0 }
  0x7b   :  { %730 = vmatprep.subr.bf16.mxu0 %v2282_v27  ;;  %1764 = vmatmul.mubr.bf16.vlgmr.msra.gmra.mrb[8].mxu1 %v2776_v0 }
  0x7c   :  { %1768 = vmatpush3.bf16.msra.mxu1 %v2298_v35  ;;  %1783 = vmatprep.mubr.msk.bf16.mxu1 %vm2195_vm2, %v2778_v34 }
  0x7d   :  { %1769 = vmatprep.subr.bf16.mxu1 %v2778_v34 }
  0x7e   :  { %731 = vmatpush1.bf16.msra.mxu0 %v2285_v29 }
  0x7f   :  { %732 = vmatprep.subr.bf16.mxu0 %v2289_v30 }
  0x80   :  { %1770 = vmatpush3.bf16.msra.mxu1 %v2315_v41 }
  0x81   :  { %1771 = vmatprep.subr.bf16.mxu1 %v2778_v34 }
  0x82   :  { %733 = vmatpush1.bf16.msra.mxu0 %v2292_v32 }
  0x83   :  { %734 = vmatprep.subr.bf16.mxu0 %v2295_v33 }
  0x84   :  { %1772 = vmatpush3.bf16.msra.mxu1 %v2326_v44 }
  0x85   :  { %1773 = vmatprep.subr.bf16.mxu1 %v2778_v34 }
  0x86   :  { %735 = vmatpush1.bf16.msra.mxu0 %v2307_v37 }
  0x87   :  { %736 = vmatprep.subr.bf16.mxu0 %v2312_v40 }
  0x88   :  { %1774 = vmatpush3.bf16.msra.mxu1 %v2338_v49 }
  0x89   :  { %1775 = vmatprep.subr.bf16.mxu1 %v2778_v34 }
  0x8a   :  { %737 = vmatpush1.bf16.msra.mxu0 %v2319_v42 }
  0x8b   :  { %738 = vmatprep.subr.bf16.mxu0 %v2322_v43 }
  0x8c   :  { %1776 = vmatpush3.bf16.msra.mxu1 %v2351_v52 }
  0x8d   :  { %1777 = vmatprep.subr.bf16.mxu1 %v2778_v34 }
  0x8e   :  { %739 = vmatpush1.bf16.msra.mxu0 %v2330_v46 }
  0x8f   :  { %740 = vmatprep.subr.bf16.mxu0 %v2335_v48 }
  0x90   :  { %1778 = vmatpush3.bf16.msra.mxu1 %v2362_v55 }
  0x91   :  { %1779 = vmatprep.subr.bf16.mxu1 %v2778_v34 }
  0x92   :  { %741 = vmatpush1.bf16.msra.mxu0 %v2345_v50 }
  0x93   :  { %742 = vmatprep.subr.bf16.mxu0 %v2348_v51 }
  0x94   :  { %1780 = vmatpush3.bf16.msra.mxu1 %v2369_v57 }
  0x95   :  { %1781 = vmatprep.subr.bf16.mxu1 %v2778_v34 }
  0x96   :  { %743 = vmatpush1.bf16.msra.mxu0 %v2357_v54 }
  0x97   :  { %845 = vmatprep.subr.bf16.mxu0 %v2277_v24 }
  0x98   :  { %1782 = vmatpush3.bf16.msra.mxu1 %v2377_v58 }
  0x99   :  { %1787 = vmatprep.subr.bf16.mxu1 %v2778_v34 }
 0x12c   :  { %v309_v1 = vpop.f32.mrb[0].mxu0 }
 0x12d   :  { %v311_v3 = vpop.f32.mrb[1].mxu0 }
 0x12e   :  { %v313_v5 = vpop.f32.mrb[2].mxu0  ;;  %v1741_v16 = vpop.f32.mrb[0].mxu1 }
 0x12f   :  { %v2418_v6 = vadd.f32 %v313_v5, %v111_v2  ;;  %v315_v7 = vpop.f32.mrb[3].mxu0  ;;  %v2431_v19 = vadd.f32 %v1741_v16, %v2422_v10  ;;  %v382_v20 = vpop.f32.mrb[1].mxu1 }
 0x130   :  { %v2420_v9 = vadd.f32 %v315_v7, %v115_v4  ;;  %v1742_v22 = vpop.f32.mrb[2].mxu1 }
 0x131   :  { %v2436_v23 = vadd.f32 %v1742_v22, %v2422_v10  ;;  %v385_v25 = vpop.f32.mrb[3].mxu1 }
 0x132   :  { %v2439_v28 = vadd.f32 %v385_v25, %v2422_v10 }
 0x134   :  { %v319_v11 = vpop.f32.mrb[4].mxu0 }
 0x135   :  { %v2424_v12 = vadd.f32 %v319_v11, %v111_v2  ;;  %v321_v13 = vpop.f32.mrb[5].mxu0 }
 0x136   :  { %v2426_v14 = vadd.f32 %v321_v13, %v115_v4  ;;  %v323_v15 = vpop.f32.mrb[6].mxu0  ;;  %v1745_v53 = vpop.f32.mrb[4].mxu1 }
 0x137   :  { %v2428_v17 = vadd.f32 %v323_v15, %v111_v2  ;;  %v325_v18 = vpop.f32.mrb[7].mxu0  ;;  %v2448_v60 = vadd.f32 %v1745_v53, %v2422_v10  ;;  %v398_v61 = vpop.f32.mrb[5].mxu1  ;;  %v312_v53 = vadd.f32 %v311_v3, %v115_v4 }
 0x138   :  { %v2433_v21 = vadd.f32 %v325_v18, %v115_v4  ;;  %v2453_v63 = vadd.f32 %v398_v61, %v2422_v10  ;;  %v1746_v5 = vpop.f32.mrb[6].mxu1 }
 0x139   :  { %2780 = vst [vmem:[#allocation13_spill] sm:$0xff] %v2448_v60  ;;  %v2456_v7 = vadd.f32 %v1746_v5, %v2422_v10  ;;  %v401_v8 = vpop.f32.mrb[7].mxu1 }
 0x13a   :  { %v2459_v11 = vadd.f32 %v401_v8, %v2422_v10 }
 0x13b   :  { %2781 = vst [vmem:[#allocation14_spill] sm:$0xff] %v2456_v7 }
 0x13c   :  { %v329_v31 = vpop.f32.mrb[8].mxu0 }
 0x13d   :  { %v2441_v38 = vadd.f32 %v329_v31, %v111_v2  ;;  %v331_v39 = vpop.f32.mrb[9].mxu0 }
 0x13e   :  { %v2443_v45 = vadd.f32 %v331_v39, %v115_v4  ;;  %v333_v47 = vpop.f32.mrb[10].mxu0 }
 0x13f   :  { %v2445_v56 = vadd.f32 %v333_v47, %v111_v2  ;;  %v335_v59 = vpop.f32.mrb[11].mxu0  ;;  %v310_v47 = vadd.f32 %v309_v1, %v111_v2  ;;  %v2472_v1 = vld [vmem:[%s2774_s5] ss:$0 sm:$0xff]  ;;  %s2196_s5 = smov [#allocation9]  }
 0x140   :  { %v2450_v62 = vadd.f32 %v335_v59, %v115_v4  ;;  %s1547_s14 = sshll.u32 %s2196_s5, 4  ;;  %s1548_s14 = int_to_ptr.vmem [resolvable:$true] %s1547_s14 }
 0x141   :  { %s2158_s15 = scalar_lea.vmem %s1548_s14, 128  ;;  %p2163_p11 = scmp.lt.s32.totalorder %s1548_s14, %s1548_s14 }
 0x142   :  { %p2159_p10 = scmp.ne.s32.totalorder %s1548_s14, %s2158_s15  ;;  %p2164_p12 = scmp.lt.s32.totalorder %s2158_s15, %s2158_s15 }
 0x144   :  { %v339_v13 = vpop.f32.mrb[12].mxu0  ;;  %p2165_p13 = por %p2164_p12, %p2163_p11 }
 0x145   :  { %v2461_v15 = vadd.f32 %v339_v13, %v111_v2  ;;  %v341_v16 = vpop.f32.mrb[13].mxu0 }
 0x146   :  { %v2463_v18 = vadd.f32 %v341_v16, %v115_v4  ;;  %v343_v22 = vpop.f32.mrb[14].mxu0  ;;  %p2166_p0 = pnand %p2165_p13, %p2159_p10 }
 0x147   :  { %2782 = vst [vmem:[#allocation15_spill] sm:$0xff] %v2461_v15  ;;  %v2465_v25 = vadd.f32 %v343_v22, %v111_v2  ;;  %v345_v31 = vpop.f32.mrb[15].mxu0 }
 0x148   :  { %2783 = vst [vmem:[#allocation16_spill] sm:$0xff] %v2463_v18  ;;  %v2467_v39 = vadd.f32 %v345_v31, %v115_v4 }
 0x149   :  { %2784 = vst [vmem:[#allocation17_spill] sm:$0xff] %v2465_v25 }
 0x14c   :  { %v639_v59 = vpop.f32.mrb[16].mxu0 }
 0x14d   :  { %v686_v61 = vadd.f32 %v639_v59, %v310_v47  ;;  %v641_v5 = vpop.f32.mrb[17].mxu0 }
 0x14e   :  { %v693_v0 = vadd.f32 %v641_v5, %v312_v53  ;;  %v643_v8 = vpop.f32.mrb[18].mxu0  ;;  %v680_v60 = vpop.f32.mrb[8].mxu1 }
 0x14f   :  { %v1616_v34 = vmul.f32 -1.442695, %v686_v61  ;;  %v644_v7 = vpop.f32.mrb[19].mxu0  ;;  %v1765_v16 = vpop.f32.mrb[9].mxu1  ;;  %v706_v3 = vadd.f32 %v2472_v1, %v680_v60  ;;  %v2786_v60 = vmov 0  }
 0x150   :  { %v1617_v13 = vmul.f32 -1.442695, %v693_v0  ;;  %v683_v18 = vpop.f32.mrb[10].mxu1  ;;  %v383_v0 = vadd.f32 %v382_v20, %v2422_v10  ;;  %v2785_v20 = vmov 0.0   ;;  %v949_v5 = vsel %vm948_vm7, 1, %v2786_v60 }
 0x151   :  { %1988 = vpow2.f32 %v1616_v34  ;;  %v1766_v22 = vpop.f32.mrb[11].mxu1  ;;  %951 = vperm.xlu1 %1919, %v949_v5   ;;  %v1066_v8 = vsel %vm1065_vm8, 1, %v2786_v60  ;;  %v1534_v16 = vsel %vm1533_vm10, 1, %v2786_v60 }
 0x152   :  { %1990 = vpow2.f32 %v1617_v13  ;;  %v1300_v13 = vsel %vm1299_vm9, 1, %v2786_v60 }
 0x155   :  { %1068 = vperm.xlu1 %1919, %v1066_v8  }
 0x159   :  { %1302 = vperm.xlu1 %1919, %v1300_v13  }
 0x15b   :  { %v1989_v25 = vpop.eup %1988 }
 0x15c   :  { %v690_v15 = vadd.f32 1.0, %v1989_v25  ;;  %v1991_v31 = vpop.eup %1990 }
 0x15d   :  { %v697_v2 = vadd.f32 1.0, %v1991_v31  ;;  %1536 = vperm.xlu1 %1919, %v1534_v16  }
 0x15e   :  { %1992 = vrcp.f32 %v690_v15  ;;  %v2476_v15 = vpop.permute.xlu0 %717 }
 0x15f   :  { %1994 = vrcp.f32 %v697_v2  ;;  %vm719_vm5 = vcmp.eq.s32.totalorder %v2476_v15, 1 }
 0x160   :  { %vm1619_vm6 = vmpackc.low %vm719_vm5, %vm719_vm5 }
 0x168   :  { %v1993_v4 = vpop.eup %1992 }
 0x169   :  { %v707_v34 = vmul.f32 %v1993_v4, %v706_v3  ;;  %v1995_v18 = vpop.eup %1994 }
 0x16a   :  { %v710_v47 = vsub.f32 1.0, %v1995_v18  ;;  %v712_v59 = vmul.f32 0.0, %v1995_v18 }
 0x16b   :  { %v708_v7 = vadd.f32 %v707_v34, %v383_v0 }
 0x16d   :  { %1996 = vtanh.f32 %v708_v7 }
 0x177   :  { %v1997_v25 = vpop.eup %1996 }
 0x178   :  { %v711_v53 = vmul.f32 %v1997_v25, %v710_v47 }
 0x17a   :  { %v2479_v61 = vadd.f32 %v712_v59, %v711_v53 }
 0x17c   :  { %v1620_v10 = vpack.c.bf16 %v2479_v61, %v2479_v61 }
 0x17e   :  { %1621 = vmatmul.mubr.msk.bf16.vlgmr.msra.gmra.mrb[20].mxu0 %vm1619_vm6, %v1620_v10  ;;  %1784 = vmatmul.mubr.msk.bf16.vlgmr.msra.gmra.mrb[12].mxu1 %vm1619_vm6, %v1620_v10 }
 0x17f   :  { %846 = vmatpush1.bf16.msra.mxu0 %v2279_v26  ;;  %1788 = vmatpush3.bf16.msra.mxu1 %v2298_v35 }
 0x180   :  { %847 = vmatprep.subr.bf16.mxu0 %v2282_v27  ;;  %1789 = vmatprep.subr.bf16.mxu1 %v2785_v20 }
 0x181   :  { %877 = vmatprep.mubr.bf16.mxu0 %v2786_v60  ;;  %1803 = vmatprep.mubr.msk.bf16.mxu1 %vm2195_vm2, %v2785_v20 }
 0x183   :  { %848 = vmatpush1.bf16.msra.mxu0 %v2285_v29  ;;  %1790 = vmatpush3.bf16.msra.mxu1 %v2315_v41 }
 0x184   :  { %849 = vmatprep.subr.bf16.mxu0 %v2289_v30  ;;  %1791 = vmatprep.subr.bf16.mxu1 %v2785_v20 }
 0x187   :  { %850 = vmatpush1.bf16.msra.mxu0 %v2292_v32  ;;  %1792 = vmatpush3.bf16.msra.mxu1 %v2326_v44 }
 0x188   :  { %851 = vmatprep.subr.bf16.mxu0 %v2295_v33  ;;  %1793 = vmatprep.subr.bf16.mxu1 %v2785_v20 }
 0x18b   :  { %852 = vmatpush1.bf16.msra.mxu0 %v2307_v37  ;;  %1794 = vmatpush3.bf16.msra.mxu1 %v2338_v49 }
 0x18c   :  { %853 = vmatprep.subr.bf16.mxu0 %v2312_v40  ;;  %1795 = vmatprep.subr.bf16.mxu1 %v2785_v20 }
 0x18f   :  { %854 = vmatpush1.bf16.msra.mxu0 %v2319_v42  ;;  %1796 = vmatpush3.bf16.msra.mxu1 %v2351_v52 }
 0x190   :  { %855 = vmatprep.subr.bf16.mxu0 %v2322_v43  ;;  %1797 = vmatprep.subr.bf16.mxu1 %v2785_v20 }
 0x193   :  { %856 = vmatpush1.bf16.msra.mxu0 %v2330_v46  ;;  %1798 = vmatpush3.bf16.msra.mxu1 %v2362_v55 }
 0x194   :  { %857 = vmatprep.subr.bf16.mxu0 %v2335_v48  ;;  %1799 = vmatprep.subr.bf16.mxu1 %v2785_v20 }
 0x197   :  { %858 = vmatpush1.bf16.msra.mxu0 %v2345_v50  ;;  %1800 = vmatpush3.bf16.msra.mxu1 %v2369_v57 }
 0x198   :  { %859 = vmatprep.subr.bf16.mxu0 %v2348_v51  ;;  %1801 = vmatprep.subr.bf16.mxu1 %v2785_v20 }
 0x19b   :  { %860 = vmatpush1.bf16.msra.mxu0 %v2357_v54  ;;  %1802 = vmatpush3.bf16.msra.mxu1 %v2377_v58 }
 0x19c   :  { %962 = vmatprep.subr.bf16.mxu0 %v2277_v24  ;;  %1807 = vmatprep.subr.bf16.mxu1 %v2785_v20 }
 0x251   :  { %v762_v22 = vpop.f32.mrb[20].mxu0  ;;  %v803_v31 = vpop.f32.mrb[12].mxu1 }
 0x252   :  { %v809_v2 = vadd.f32 %v762_v22, %v2418_v6  ;;  %v764_v3 = vpop.f32.mrb[21].mxu0  ;;  %v1785_v4 = vpop.f32.mrb[13].mxu1  ;;  %v823_v6 = vadd.f32 %v2472_v1, %v803_v31 }
 0x253   :  { %v816_v0 = vadd.f32 %v764_v3, %v2420_v9  ;;  %v766_v34 = vpop.f32.mrb[22].mxu0  ;;  %v806_v7 = vpop.f32.mrb[14].mxu1  ;;  %v720_v9 = vsel %vm719_vm5, %v2479_v61, 0.0 }
 0x254   :  { %v1625_v18 = vmul.f32 -1.442695, %v809_v2  ;;  %v767_v47 = vpop.f32.mrb[23].mxu0  ;;  %v1786_v25 = vpop.f32.mrb[15].mxu1 }
 0x255   :  { %v1626_v53 = vmul.f32 -1.442695, %v816_v0  ;;  %v835_v34 = vpop.permute.xlu0 %834 }
 0x256   :  { %1998 = vpow2.f32 %v1625_v18  ;;  %vm836_vm11 = vcmp.eq.s32.totalorder %v835_v34, 1 }
 0x257   :  { %2000 = vpow2.f32 %v1626_v53 }
 0x260   :  { %v1999_v36 = vpop.eup %1998 }
 0x261   :  { %v2001_v59 = vpop.eup %2000  ;;  %v813_v10 = vadd.f32 1.0, %v1999_v36 }
 0x262   :  { %v820_v5 = vadd.f32 1.0, %v2001_v59 }
 0x263   :  { %2002 = vrcp.f32 %v813_v10 }
 0x264   :  { %2004 = vrcp.f32 %v820_v5 }
 0x26d   :  { %v2003_v8 = vpop.eup %2002 }
 0x26e   :  { %v2005_v13 = vpop.eup %2004  ;;  %v824_v16 = vmul.f32 %v2003_v8, %v823_v6 }
 0x26f   :  { %v829_v22 = vmul.f32 %v2005_v13, %v720_v9  ;;  %v827_v3 = vsub.f32 1.0, %v2005_v13 }
 0x270   :  { %v825_v2 = vadd.f32 %v824_v16, %v2439_v28 }
 0x272   :  { %2006 = vtanh.f32 %v825_v2 }
 0x27c   :  { %v2007_v4 = vpop.eup %2006 }
 0x27d   :  { %v828_v0 = vmul.f32 %v2007_v4, %v827_v3 }
 0x27f   :  { %v830_v7 = vadd.f32 %v829_v22, %v828_v0 }
 0x281   :  { %v2536_v18 = vsel %vm836_vm11, %v830_v7, %v720_v9  ;;  %v952_v7 = vpop.permute.xlu1 %951 }
 0x282   :  { %v844_v31 = vpack.c.bf16 %v2536_v18, %v2536_v18  ;;  %vm953_vm12 = vcmp.eq.s32.totalorder %v952_v7, 1 }
 0x284   :  { %878 = vmatmul.mubr.bf16.vlgmr.msra.gmra.mrb[24].mxu0 %v844_v31  ;;  %1804 = vmatmul.mubr.bf16.vlgmr.msra.gmra.mrb[16].mxu1 %v844_v31 }
 0x285   :  { %963 = vmatpush1.bf16.msra.mxu0 %v2279_v26  ;;  %1808 = vmatpush3.bf16.msra.mxu1 %v2298_v35 }
 0x286   :  { %964 = vmatprep.subr.bf16.mxu0 %v2282_v27  ;;  %1809 = vmatprep.subr.bf16.mxu1 %v2785_v20 }
 0x287   :  { %994 = vmatprep.mubr.bf16.mxu0 %v2786_v60  ;;  %1823 = vmatprep.mubr.msk.bf16.mxu1 %vm2195_vm2, %v2785_v20 }
 0x289   :  { %965 = vmatpush1.bf16.msra.mxu0 %v2285_v29  ;;  %1810 = vmatpush3.bf16.msra.mxu1 %v2315_v41 }
 0x28a   :  { %966 = vmatprep.subr.bf16.mxu0 %v2289_v30  ;;  %1811 = vmatprep.subr.bf16.mxu1 %v2785_v20 }
 0x28d   :  { %967 = vmatpush1.bf16.msra.mxu0 %v2292_v32  ;;  %1812 = vmatpush3.bf16.msra.mxu1 %v2326_v44 }
 0x28e   :  { %968 = vmatprep.subr.bf16.mxu0 %v2295_v33  ;;  %1813 = vmatprep.subr.bf16.mxu1 %v2785_v20 }
 0x291   :  { %969 = vmatpush1.bf16.msra.mxu0 %v2307_v37  ;;  %1814 = vmatpush3.bf16.msra.mxu1 %v2338_v49 }
 0x292   :  { %970 = vmatprep.subr.bf16.mxu0 %v2312_v40  ;;  %1815 = vmatprep.subr.bf16.mxu1 %v2785_v20 }
 0x295   :  { %971 = vmatpush1.bf16.msra.mxu0 %v2319_v42  ;;  %1816 = vmatpush3.bf16.msra.mxu1 %v2351_v52 }
 0x296   :  { %972 = vmatprep.subr.bf16.mxu0 %v2322_v43  ;;  %1817 = vmatprep.subr.bf16.mxu1 %v2785_v20 }
 0x299   :  { %973 = vmatpush1.bf16.msra.mxu0 %v2330_v46  ;;  %1818 = vmatpush3.bf16.msra.mxu1 %v2362_v55 }
 0x29a   :  { %974 = vmatprep.subr.bf16.mxu0 %v2335_v48  ;;  %1819 = vmatprep.subr.bf16.mxu1 %v2785_v20 }
 0x29d   :  { %975 = vmatpush1.bf16.msra.mxu0 %v2345_v50  ;;  %1820 = vmatpush3.bf16.msra.mxu1 %v2369_v57 }
 0x29e   :  { %976 = vmatprep.subr.bf16.mxu0 %v2348_v51  ;;  %1821 = vmatprep.subr.bf16.mxu1 %v2785_v20 }
 0x2a1   :  { %977 = vmatpush1.bf16.msra.mxu0 %v2357_v54  ;;  %1822 = vmatpush3.bf16.msra.mxu1 %v2377_v58 }
 0x2a2   :  { %1079 = vmatprep.subr.bf16.mxu0 %v2277_v24  ;;  %1827 = vmatprep.subr.bf16.mxu1 %v2785_v20 }
 0x357   :  { %v879_v28 = vpop.f32.mrb[24].mxu0  ;;  %v920_v15 = vpop.f32.mrb[16].mxu1 }
 0x358   :  { %v926_v61 = vadd.f32 %v879_v28, %v2424_v12  ;;  %v881_v47 = vpop.f32.mrb[25].mxu0  ;;  %v1805_v25 = vpop.f32.mrb[17].mxu1  ;;  %v940_v2 = vadd.f32 %v2472_v1, %v920_v15 }
 0x359   :  { %v933_v53 = vadd.f32 %v881_v47, %v2426_v14  ;;  %v883_v36 = vpop.f32.mrb[26].mxu0  ;;  %v923_v59 = vpop.f32.mrb[18].mxu1 }
 0x35a   :  { %v1627_v10 = vmul.f32 -1.442695, %v926_v61  ;;  %v884_v5 = vpop.f32.mrb[27].mxu0  ;;  %v1806_v6 = vpop.f32.mrb[19].mxu1 }
 0x35b   :  { %v1628_v8 = vmul.f32 -1.442695, %v933_v53 }
 0x35c   :  { %2008 = vpow2.f32 %v1627_v10 }
 0x35d   :  { %2010 = vpow2.f32 %v1628_v8 }
 0x366   :  { %v2009_v13 = vpop.eup %2008 }
 0x367   :  { %v930_v9 = vadd.f32 1.0, %v2009_v13  ;;  %v2011_v16 = vpop.eup %2010 }
 0x368   :  { %v937_v22 = vadd.f32 1.0, %v2011_v16 }
 0x369   :  { %2012 = vrcp.f32 %v930_v9 }
 0x36a   :  { %2014 = vrcp.f32 %v937_v22 }
 0x373   :  { %v2013_v12 = vpop.eup %2012 }
 0x374   :  { %v941_v3 = vmul.f32 %v2013_v12, %v940_v2  ;;  %v2015_v4 = vpop.eup %2014 }
 0x375   :  { %v944_v0 = vsub.f32 1.0, %v2015_v4  ;;  %v946_v28 = vmul.f32 %v2015_v4, %v2536_v18 }
 0x376   :  { %v942_v14 = vadd.f32 %v941_v3, %v2431_v19 }
 0x378   :  { %2016 = vtanh.f32 %v942_v14 }
 0x382   :  { %v2017_v34 = vpop.eup %2016 }
 0x383   :  { %v945_v31 = vmul.f32 %v2017_v34, %v944_v0 }
 0x385   :  { %v947_v61 = vadd.f32 %v946_v28, %v945_v31  ;;  %v1069_v28 = vpop.permute.xlu1 %1068 }
 0x386   :  { %vm1070_vm13 = vcmp.eq.s32.totalorder %v1069_v28, 1 }
 0x387   :  { %v2581_v47 = vsel %vm953_vm12, %v947_v61, %v2536_v18 }
 0x388   :  { %v961_v15 = vpack.c.bf16 %v2581_v47, %v2581_v47 }
 0x38a   :  { %995 = vmatmul.mubr.bf16.vlgmr.msra.gmra.mrb[28].mxu0 %v961_v15  ;;  %1824 = vmatmul.mubr.bf16.vlgmr.msra.gmra.mrb[20].mxu1 %v961_v15 }
 0x38b   :  { %1080 = vmatpush1.bf16.msra.mxu0 %v2279_v26  ;;  %1828 = vmatpush3.bf16.msra.mxu1 %v2298_v35 }
 0x38c   :  { %1081 = vmatprep.subr.bf16.mxu0 %v2282_v27  ;;  %1829 = vmatprep.subr.bf16.mxu1 %v2785_v20 }
 0x38d   :  { %1111 = vmatprep.mubr.bf16.mxu0 %v2786_v60  ;;  %1843 = vmatprep.mubr.msk.bf16.mxu1 %vm2195_vm2, %v2785_v20 }
 0x38f   :  { %1082 = vmatpush1.bf16.msra.mxu0 %v2285_v29  ;;  %1830 = vmatpush3.bf16.msra.mxu1 %v2315_v41 }
 0x390   :  { %1083 = vmatprep.subr.bf16.mxu0 %v2289_v30  ;;  %1831 = vmatprep.subr.bf16.mxu1 %v2785_v20 }
 0x393   :  { %1084 = vmatpush1.bf16.msra.mxu0 %v2292_v32  ;;  %1832 = vmatpush3.bf16.msra.mxu1 %v2326_v44 }
 0x394   :  { %1085 = vmatprep.subr.bf16.mxu0 %v2295_v33  ;;  %1833 = vmatprep.subr.bf16.mxu1 %v2785_v20 }
 0x397   :  { %1086 = vmatpush1.bf16.msra.mxu0 %v2307_v37  ;;  %1834 = vmatpush3.bf16.msra.mxu1 %v2338_v49 }
 0x398   :  { %1087 = vmatprep.subr.bf16.mxu0 %v2312_v40  ;;  %1835 = vmatprep.subr.bf16.mxu1 %v2785_v20 }
 0x39b   :  { %1088 = vmatpush1.bf16.msra.mxu0 %v2319_v42  ;;  %1836 = vmatpush3.bf16.msra.mxu1 %v2351_v52 }
 0x39c   :  { %1089 = vmatprep.subr.bf16.mxu0 %v2322_v43  ;;  %1837 = vmatprep.subr.bf16.mxu1 %v2785_v20 }
 0x39f   :  { %1090 = vmatpush1.bf16.msra.mxu0 %v2330_v46  ;;  %1838 = vmatpush3.bf16.msra.mxu1 %v2362_v55 }
 0x3a0   :  { %1091 = vmatprep.subr.bf16.mxu0 %v2335_v48  ;;  %1839 = vmatprep.subr.bf16.mxu1 %v2785_v20 }
 0x3a3   :  { %1092 = vmatpush1.bf16.msra.mxu0 %v2345_v50  ;;  %1840 = vmatpush3.bf16.msra.mxu1 %v2369_v57 }
 0x3a4   :  { %1093 = vmatprep.subr.bf16.mxu0 %v2348_v51  ;;  %1841 = vmatprep.subr.bf16.mxu1 %v2785_v20 }
 0x3a7   :  { %1094 = vmatpush1.bf16.msra.mxu0 %v2357_v54  ;;  %1842 = vmatpush3.bf16.msra.mxu1 %v2377_v58 }
 0x3a8   :  { %1196 = vmatprep.subr.bf16.mxu0 %v2277_v24  ;;  %1847 = vmatprep.subr.bf16.mxu1 %v2785_v20 }
 0x45d   :  { %v996_v19 = vpop.f32.mrb[28].mxu0  ;;  %v1037_v18 = vpop.f32.mrb[20].mxu1 }
 0x45e   :  { %v1043_v25 = vadd.f32 %v996_v19, %v2428_v17  ;;  %v998_v53 = vpop.f32.mrb[29].mxu0  ;;  %v1825_v36 = vpop.f32.mrb[21].mxu1  ;;  %v1057_v3 = vadd.f32 %v2472_v1, %v1037_v18 }
 0x45f   :  { %v1050_v59 = vadd.f32 %v998_v53, %v2433_v21  ;;  %v1000_v10 = vpop.f32.mrb[30].mxu0  ;;  %v1040_v5 = vpop.f32.mrb[22].mxu1 }
 0x460   :  { %v1629_v6 = vmul.f32 -1.442695, %v1043_v25  ;;  %v1001_v8 = vpop.f32.mrb[31].mxu0  ;;  %v1826_v13 = vpop.f32.mrb[23].mxu1 }
 0x461   :  { %v1630_v9 = vmul.f32 -1.442695, %v1050_v59 }
 0x462   :  { %2018 = vpow2.f32 %v1629_v6 }
 0x463   :  { %2020 = vpow2.f32 %v1630_v9 }
 0x46c   :  { %v2019_v16 = vpop.eup %2018 }
 0x46d   :  { %v1047_v22 = vadd.f32 1.0, %v2019_v16  ;;  %v2021_v2 = vpop.eup %2020 }
 0x46e   :  { %v1054_v12 = vadd.f32 1.0, %v2021_v2 }
 0x46f   :  { %2022 = vrcp.f32 %v1047_v22 }
 0x470   :  { %2024 = vrcp.f32 %v1054_v12  ;;  %v1186_v12 = vpop.permute.xlu0 %1185 }
 0x471   :  { %vm1187_vm14 = vcmp.eq.s32.totalorder %v1186_v12, 1 }
 0x479   :  { %v2023_v17 = vpop.eup %2022 }
 0x47a   :  { %v1058_v14 = vmul.f32 %v2023_v17, %v1057_v3  ;;  %v2025_v4 = vpop.eup %2024 }
 0x47b   :  { %v1061_v0 = vsub.f32 1.0, %v2025_v4  ;;  %v1063_v7 = vmul.f32 %v2025_v4, %v2581_v47  ;;  %v2686_v4 = vld [vmem:[#allocation8 + $0x18] ss:$12 sps:$4 sm:$0xff]  }
 0x47c   :  { %v1059_v21 = vadd.f32 %v1058_v14, %v2436_v23 }
 0x47e   :  { %2026 = vtanh.f32 %v1059_v21  ;;  %v2675_v21 = vld [vmem:[#allocation8] ss:$12 sps:$4 sm:$0xff]  }
 0x488   :  { %v2027_v34 = vpop.eup %2026 }
 0x489   :  { %v1062_v31 = vmul.f32 %v2027_v34, %v1061_v0  ;;  %v2690_v0 = vld [vmem:[#allocation8 + $0x34] ss:$12 sps:$4 sm:$0xff]   ;;  %v2698_v34 = vld [vmem:[#allocation8 + $0x4c] ss:$12 sps:$4 sm:$0xff]  }
 0x48b   :  { %v1064_v61 = vadd.f32 %v1063_v7, %v1062_v31 }
 0x48d   :  { %v2626_v15 = vsel %vm1070_vm13, %v1064_v61, %v2581_v47 }
 0x48e   :  { %v1078_v19 = vpack.c.bf16 %v2626_v15, %v2626_v15 }
 0x490   :  { %1112 = vmatmul.mubr.bf16.vlgmr.msra.gmra.mrb[32].mxu0 %v1078_v19  ;;  %1844 = vmatmul.mubr.bf16.vlgmr.msra.gmra.mrb[24].mxu1 %v1078_v19 }
 0x491   :  { %1197 = vmatpush1.bf16.msra.mxu0 %v2279_v26  ;;  %1848 = vmatpush3.bf16.msra.mxu1 %v2298_v35 }
 0x492   :  { %1198 = vmatprep.subr.bf16.mxu0 %v2282_v27  ;;  %1849 = vmatprep.subr.bf16.mxu1 %v2785_v20 }
 0x493   :  { %1228 = vmatprep.mubr.bf16.mxu0 %v2786_v60  ;;  %1863 = vmatprep.mubr.msk.bf16.mxu1 %vm2195_vm2, %v2785_v20 }
 0x495   :  { %1199 = vmatpush1.bf16.msra.mxu0 %v2285_v29  ;;  %1850 = vmatpush3.bf16.msra.mxu1 %v2315_v41 }
 0x496   :  { %1200 = vmatprep.subr.bf16.mxu0 %v2289_v30  ;;  %1851 = vmatprep.subr.bf16.mxu1 %v2785_v20 }
 0x499   :  { %1201 = vmatpush1.bf16.msra.mxu0 %v2292_v32  ;;  %1852 = vmatpush3.bf16.msra.mxu1 %v2326_v44 }
 0x49a   :  { %1202 = vmatprep.subr.bf16.mxu0 %v2295_v33  ;;  %1853 = vmatprep.subr.bf16.mxu1 %v2785_v20 }
 0x49d   :  { %1203 = vmatpush1.bf16.msra.mxu0 %v2307_v37  ;;  %1854 = vmatpush3.bf16.msra.mxu1 %v2338_v49 }
 0x49e   :  { %1204 = vmatprep.subr.bf16.mxu0 %v2312_v40  ;;  %1855 = vmatprep.subr.bf16.mxu1 %v2785_v20 }
 0x4a1   :  { %1205 = vmatpush1.bf16.msra.mxu0 %v2319_v42  ;;  %1856 = vmatpush3.bf16.msra.mxu1 %v2351_v52 }
 0x4a2   :  { %1206 = vmatprep.subr.bf16.mxu0 %v2322_v43  ;;  %1857 = vmatprep.subr.bf16.mxu1 %v2785_v20 }
 0x4a5   :  { %1207 = vmatpush1.bf16.msra.mxu0 %v2330_v46  ;;  %1858 = vmatpush3.bf16.msra.mxu1 %v2362_v55 }
 0x4a6   :  { %1208 = vmatprep.subr.bf16.mxu0 %v2335_v48  ;;  %1859 = vmatprep.subr.bf16.mxu1 %v2785_v20 }
 0x4a9   :  { %1209 = vmatpush1.bf16.msra.mxu0 %v2345_v50  ;;  %1860 = vmatpush3.bf16.msra.mxu1 %v2369_v57 }
 0x4aa   :  { %1210 = vmatprep.subr.bf16.mxu0 %v2348_v51  ;;  %1861 = vmatprep.subr.bf16.mxu1 %v2785_v20 }
 0x4ad   :  { %1211 = vmatpush1.bf16.msra.mxu0 %v2357_v54  ;;  %1862 = vmatpush3.bf16.msra.mxu1 %v2377_v58 }
 0x4ae   :  { %1313 = vmatprep.subr.bf16.mxu0 %v2277_v24  ;;  %1867 = vmatprep.subr.bf16.mxu1 %v2785_v20 }
 0x563   :  { %v1113_v26 = vpop.f32.mrb[32].mxu0  ;;  %v1154_v27 = vpop.f32.mrb[24].mxu1 }
 0x564   :  { %v1160_v29 = vadd.f32 %v1113_v26, %v2441_v38  ;;  %v1115_v30 = vpop.f32.mrb[33].mxu0  ;;  %v1845_v32 = vpop.f32.mrb[25].mxu1  ;;  %v1174_v6 = vadd.f32 %v2472_v1, %v1154_v27 }
 0x565   :  { %v1167_v33 = vadd.f32 %v1115_v30, %v2443_v45  ;;  %v1117_v23 = vpop.f32.mrb[34].mxu0  ;;  %v1157_v47 = vpop.f32.mrb[26].mxu1 }
 0x566   :  { %v1631_v18 = vmul.f32 -1.442695, %v1160_v29  ;;  %v1118_v25 = vpop.f32.mrb[35].mxu0  ;;  %v1846_v53 = vpop.f32.mrb[27].mxu1  ;;  %v2076_v23 = vld [vmem:[#allocation8 + $0x20] ss:$12 sps:$4 sm:$0xff]  }
 0x567   :  { %v1632_v36 = vmul.f32 -1.442695, %v1167_v33  ;;  %v1303_v29 = vpop.permute.xlu1 %1302  ;;  %v2077_v47 = vld [vmem:[#allocation8 + $0x38] ss:$12 sps:$4 sm:$0xff]   ;;  %v2081_v53 = vld [vmem:[#allocation8 + $0x60] ss:$12 sps:$4 sm:$0xff]  }
 0x568   :  { %2028 = vpow2.f32 %v1631_v18  ;;  %vm1304_vm15 = vcmp.eq.s32.totalorder %v1303_v29, 1  ;;  %v2079_v18 = vld [vmem:[#allocation8 + $0x50] ss:$12 sps:$4 sm:$0xff]  }
 0x569   :  { %2030 = vpow2.f32 %v1632_v36  ;;  %v2080_v25 = vld [vmem:[#allocation8 + $0x64] ss:$12 sps:$4 sm:$0xff]   ;;  %v2082_v36 = vld [vmem:[#allocation8 + $0x68] ss:$12 sps:$4 sm:$0xff]  }
 0x572   :  { %v2029_v59 = vpop.eup %2028 }
 0x573   :  { %v1164_v24 = vadd.f32 1.0, %v2029_v59  ;;  %v2031_v10 = vpop.eup %2030  ;;  %v2083_v59 = vld [vmem:[#allocation8 + $0x7c] ss:$12 sps:$4 sm:$0xff]  }
 0x574   :  { %v1171_v5 = vadd.f32 1.0, %v2031_v10  ;;  %v2085_v10 = vld [vmem:[#allocation8 + $0x80] ss:$12 sps:$4 sm:$0xff]  }
 0x575   :  { %2032 = vrcp.f32 %v1164_v24  ;;  %v2084_v24 = vld [vmem:[#allocation8 + $0x78] ss:$12 sps:$4 sm:$0xff]  }
 0x576   :  { %2034 = vrcp.f32 %v1171_v5  ;;  %v2086_v5 = vld [vmem:[#allocation8 + $0x94] ss:$12 sps:$4 sm:$0xff]  }
 0x57f   :  { %v2033_v38 = vpop.eup %2032 }
 0x580   :  { %v1175_v8 = vmul.f32 %v2033_v38, %v1174_v6  ;;  %v2035_v13 = vpop.eup %2034  ;;  %v2087_v6 = vld [vmem:[#allocation8 + $0x90] ss:$12 sps:$4 sm:$0xff]   ;;  %v2088_v38 = vld [vmem:[#allocation8 + $0x98] ss:$12 sps:$4 sm:$0xff]  }
 0x581   :  { %v1178_v9 = vsub.f32 1.0, %v2035_v13  ;;  %v1180_v22 = vmul.f32 %v2035_v13, %v2626_v15  ;;  %v2091_v13 = vld [vmem:[#allocation8 + $0xb0] ss:$12 sps:$4 sm:$0xff]  }
 0x582   :  { %v1176_v45 = vadd.f32 %v1175_v8, %v2453_v63  ;;  %v2679_v63 = vld [vmem:[#allocation8 + $0x1c] ss:$12 sps:$4 sm:$0xff]   ;;  %v2089_v8 = vld [vmem:[#allocation8 + $0xac] ss:$12 sps:$4 sm:$0xff]  }
 0x584   :  { %2036 = vtanh.f32 %v1176_v45  ;;  %v2090_v45 = vld [vmem:[#allocation8 + $0xa8] ss:$12 sps:$4 sm:$0xff]  }
 0x58e   :  { %v2037_v16 = vpop.eup %2036 }
 0x58f   :  { %v1179_v2 = vmul.f32 %v2037_v16, %v1178_v9 }
 0x591   :  { %v1181_v3 = vadd.f32 %v1180_v22, %v1179_v2  ;;  %v2787_v22 = vld [vmem:[#allocation15_spill] sm:$0xff] }
 0x593   :  { %v2671_v17 = vsel %vm1187_vm14, %v1181_v3, %v2626_v15 }
 0x594   :  { %v1195_v14 = vpack.c.bf16 %v2671_v17, %v2671_v17 }
 0x596   :  { %1229 = vmatmul.mubr.bf16.vlgmr.msra.gmra.mrb[36].mxu0 %v1195_v14  ;;  %1864 = vmatmul.mubr.bf16.vlgmr.msra.gmra.mrb[28].mxu1 %v1195_v14 }
 0x597   :  { %1314 = vmatpush1.bf16.msra.mxu0 %v2675_v21  ;;  %1868 = vmatpush3.bf16.msra.mxu1 %v2298_v35  ;;  %v2694_v35 = vld [vmem:[#allocation8 + $0x30] ss:$12 sps:$4 sm:$0xff]  }
 0x598   :  { %1315 = vmatprep.subr.bf16.mxu0 %v2679_v63  ;;  %1869 = vmatprep.subr.bf16.mxu1 %v2785_v20 }
 0x599   :  { %1345 = vmatprep.mubr.bf16.mxu0 %v2786_v60  ;;  %1883 = vmatprep.mubr.msk.bf16.mxu1 %vm2195_vm2, %v2785_v20 }
 0x59b   :  { %1316 = vmatpush1.bf16.msra.mxu0 %v2686_v4  ;;  %1870 = vmatpush3.bf16.msra.mxu1 %v2315_v41 }
 0x59c   :  { %1317 = vmatprep.subr.bf16.mxu0 %v2690_v0  ;;  %1871 = vmatprep.subr.bf16.mxu1 %v2785_v20 }
 0x59f   :  { %1318 = vmatpush1.bf16.msra.mxu0 %v2694_v35  ;;  %1872 = vmatpush3.bf16.msra.mxu1 %v2326_v44 }
 0x5a0   :  { %1319 = vmatprep.subr.bf16.mxu0 %v2698_v34  ;;  %1873 = vmatprep.subr.bf16.mxu1 %v2785_v20 }
 0x5a3   :  { %1320 = vmatpush1.bf16.msra.mxu0 %v2307_v37  ;;  %1874 = vmatpush3.bf16.msra.mxu1 %v2338_v49  ;;  %v2074_v37 = vld [vmem:[#allocation8 + $0x4] ss:$12 sps:$4 sm:$0xff]  }
 0x5a4   :  { %1321 = vmatprep.subr.bf16.mxu0 %v2312_v40  ;;  %1875 = vmatprep.subr.bf16.mxu1 %v2785_v20 }
 0x5a7   :  { %1322 = vmatpush1.bf16.msra.mxu0 %v2319_v42  ;;  %1876 = vmatpush3.bf16.msra.mxu1 %v2351_v52 }
 0x5a8   :  { %1323 = vmatprep.subr.bf16.mxu0 %v2322_v43  ;;  %1877 = vmatprep.subr.bf16.mxu1 %v2785_v20 }
 0x5ab   :  { %1324 = vmatpush1.bf16.msra.mxu0 %v2330_v46  ;;  %1878 = vmatpush3.bf16.msra.mxu1 %v2362_v55 }
 0x5ac   :  { %1325 = vmatprep.subr.bf16.mxu0 %v2335_v48  ;;  %1879 = vmatprep.subr.bf16.mxu1 %v2785_v20 }
 0x5af   :  { %1326 = vmatpush1.bf16.msra.mxu0 %v2345_v50  ;;  %1880 = vmatpush3.bf16.msra.mxu1 %v2369_v57 }
 0x5b0   :  { %1327 = vmatprep.subr.bf16.mxu0 %v2348_v51  ;;  %1881 = vmatprep.subr.bf16.mxu1 %v2785_v20 }
 0x5b3   :  { %1328 = vmatpush1.bf16.msra.mxu0 %v2357_v54  ;;  %1882 = vmatpush3.bf16.msra.mxu1 %v2377_v58 }
 0x5b4   :  { %1430 = vmatprep.subr.bf16.mxu0 %v2074_v37  ;;  %1887 = vmatprep.subr.bf16.mxu1 %v2785_v20 }
 0x669   :  { %v1230_v40 = vpop.f32.mrb[36].mxu0  ;;  %v1271_v41 = vpop.f32.mrb[28].mxu1 }
 0x66a   :  { %v1277_v42 = vadd.f32 %v1230_v40, %v2445_v56  ;;  %v1232_v43 = vpop.f32.mrb[37].mxu0  ;;  %v1865_v44 = vpop.f32.mrb[29].mxu1  ;;  %v1291_v31 = vadd.f32 %v2472_v1, %v1271_v41 }
 0x66b   :  { %v1284_v46 = vadd.f32 %v1232_v43, %v2450_v62  ;;  %v1234_v48 = vpop.f32.mrb[38].mxu0  ;;  %v1274_v49 = vpop.f32.mrb[30].mxu1 }
 0x66c   :  { %v1633_v50 = vmul.f32 -1.442695, %v1277_v42  ;;  %v1235_v51 = vpop.f32.mrb[39].mxu0  ;;  %v1866_v52 = vpop.f32.mrb[31].mxu1 }
 0x66d   :  { %v1634_v54 = vmul.f32 -1.442695, %v1284_v46  ;;  %v2789_v46 = vld [vmem:[#allocation13_spill] sm:$0xff]  ;;  %v1420_v52 = vpop.permute.xlu0 %1419 }
 0x66e   :  { %2038 = vpow2.f32 %v1633_v50  ;;  %vm1421_vm0 = vcmp.eq.s32.totalorder %v1420_v52, 1 }
 0x66f   :  { %2040 = vpow2.f32 %v1634_v54 }
 0x678   :  { %v2039_v55 = vpop.eup %2038 }
 0x679   :  { %v1281_v57 = vadd.f32 1.0, %v2039_v55  ;;  %v2041_v58 = vpop.eup %2040 }
 0x67a   :  { %v1288_v7 = vadd.f32 1.0, %v2041_v58 }
 0x67b   :  { %2042 = vrcp.f32 %v1281_v57 }
 0x67c   :  { %2044 = vrcp.f32 %v1288_v7 }
 0x685   :  { %v2043_v56 = vpop.eup %2042 }
 0x686   :  { %v1292_v28 = vmul.f32 %v2043_v56, %v1291_v31  ;;  %v2045_v61 = vpop.eup %2044 }
 0x687   :  { %v1295_v15 = vsub.f32 1.0, %v2045_v61  ;;  %v1297_v26 = vmul.f32 %v2045_v61, %v2671_v17 }
 0x688   :  { %v1293_v62 = vadd.f32 %v1292_v28, %v2459_v11  ;;  %v2075_v11 = vld [vmem:[#allocation8 + $0x8] ss:$12 sps:$4 sm:$0xff]  }
 0x689   :  { %v2790_v28 = vld [vmem:[#allocation17_spill] sm:$0xff] }
 0x68a   :  { %2046 = vtanh.f32 %v1293_v62 }
 0x694   :  { %v2047_v19 = vpop.eup %2046 }
 0x695   :  { %v1296_v27 = vmul.f32 %v2047_v19, %v1295_v15 }
 0x697   :  { %v1298_v30 = vadd.f32 %v1297_v26, %v1296_v27 }
 0x699   :  { %v2727_v32 = vsel %vm1304_vm15, %v1298_v30, %v2671_v17  ;;  %v2788_v17 = vld [vmem:[#allocation16_spill] sm:$0xff] }
 0x69a   :  { %v1312_v33 = vpack.c.bf16 %v2727_v32, %v2727_v32 }
 0x69c   :  { %1346 = vmatmul.mubr.bf16.vlgmr.msra.gmra.mrb[40].mxu0 %v1312_v33  ;;  %1884 = vmatmul.mubr.bf16.vlgmr.msra.gmra.mrb[32].mxu1 %v1312_v33 }
 0x69d   :  { %1431 = vmatpush1.bf16.msra.mxu0 %v2675_v21  ;;  %1888 = vmatpush3.bf16.msra.mxu1 %v2075_v11 }
 0x69e   :  { %1432 = vmatprep.subr.bf16.mxu0 %v2679_v63  ;;  %1889 = vmatprep.subr.bf16.mxu1 %v2785_v20 }
 0x69f   :  { %1462 = vmatprep.mubr.bf16.mxu0 %v2786_v60  ;;  %1903 = vmatprep.mubr.msk.bf16.mxu1 %vm2195_vm2, %v2785_v20  ;;  %v2078_v60 = vld [vmem:[#allocation8 + $0x48] ss:$12 sps:$4 sm:$0xff]  }
 0x6a1   :  { %1433 = vmatpush1.bf16.msra.mxu0 %v2686_v4  ;;  %1890 = vmatpush3.bf16.msra.mxu1 %v2076_v23 }
 0x6a2   :  { %1434 = vmatprep.subr.bf16.mxu0 %v2690_v0  ;;  %1891 = vmatprep.subr.bf16.mxu1 %v2785_v20 }
 0x6a5   :  { %1435 = vmatpush1.bf16.msra.mxu0 %v2694_v35  ;;  %1892 = vmatpush3.bf16.msra.mxu1 %v2077_v47 }
 0x6a6   :  { %1436 = vmatprep.subr.bf16.mxu0 %v2698_v34  ;;  %1893 = vmatprep.subr.bf16.mxu1 %v2785_v20 }
 0x6a9   :  { %1437 = vmatpush1.bf16.msra.mxu0 %v2078_v60  ;;  %1894 = vmatpush3.bf16.msra.mxu1 %v2079_v18 }
 0x6aa   :  { %1438 = vmatprep.subr.bf16.mxu0 %v2080_v25  ;;  %1895 = vmatprep.subr.bf16.mxu1 %v2785_v20 }
 0x6ad   :  { %1439 = vmatpush1.bf16.msra.mxu0 %v2081_v53  ;;  %1896 = vmatpush3.bf16.msra.mxu1 %v2082_v36  ;;  %v2791_v36 = vld [vmem:[#allocation14_spill] sm:$0xff] }
 0x6ae   :  { %1440 = vmatprep.subr.bf16.mxu0 %v2083_v59  ;;  %1897 = vmatprep.subr.bf16.mxu1 %v2785_v20 }
 0x6b1   :  { %1441 = vmatpush1.bf16.msra.mxu0 %v2084_v24  ;;  %1898 = vmatpush3.bf16.msra.mxu1 %v2085_v10 }
 0x6b2   :  { %1442 = vmatprep.subr.bf16.mxu0 %v2086_v5  ;;  %1899 = vmatprep.subr.bf16.mxu1 %v2785_v20  ;;  %v1537_v5 = vpop.permute.xlu1 %1536 }
 0x6b3   :  { %vm1538_vm1 = vcmp.eq.s32.totalorder %v1537_v5, 1 }
 0x6b5   :  { %1443 = vmatpush1.bf16.msra.mxu0 %v2087_v6  ;;  %1900 = vmatpush3.bf16.msra.mxu1 %v2088_v38 }
 0x6b6   :  { %1444 = vmatprep.subr.bf16.mxu0 %v2089_v8  ;;  %1901 = vmatprep.subr.bf16.mxu1 %v2785_v20 }
 0x6b9   :  { %1445 = vmatpush1.bf16.msra.mxu0 %v2090_v45  ;;  %1902 = vmatpush3.bf16.msra.mxu1 %v2091_v13 }
 0x76f   :  { %v1347_v9 = vpop.f32.mrb[40].mxu0  ;;  %v1388_v16 = vpop.f32.mrb[32].mxu1 }
 0x770   :  { %v1394_v2 = vadd.f32 %v1347_v9, %v2787_v22  ;;  %v1349_v12 = vpop.f32.mrb[41].mxu0  ;;  %v1885_v3 = vpop.f32.mrb[33].mxu1  ;;  %v1408_v42 = vadd.f32 %v2472_v1, %v1388_v16 }
 0x771   :  { %v1401_v14 = vadd.f32 %v1349_v12, %v2788_v17  ;;  %v1351_v21 = vpop.f32.mrb[42].mxu0  ;;  %v1391_v63 = vpop.f32.mrb[34].mxu1 }
 0x772   :  { %v1635_v4 = vmul.f32 -1.442695, %v1394_v2  ;;  %v1352_v0 = vpop.f32.mrb[43].mxu0  ;;  %v1886_v35 = vpop.f32.mrb[35].mxu1 }
 0x773   :  { %v1636_v34 = vmul.f32 -1.442695, %v1401_v14 }
 0x774   :  { %2048 = vpow2.f32 %v1635_v4 }
 0x775   :  { %2050 = vpow2.f32 %v1636_v34 }
 0x77e   :  { %v2049_v20 = vpop.eup %2048 }
 0x77f   :  { %v1398_v37 = vadd.f32 1.0, %v2049_v20  ;;  %v2051_v40 = vpop.eup %2050 }
 0x780   :  { %v1405_v41 = vadd.f32 1.0, %v2051_v40 }
 0x781   :  { %2052 = vrcp.f32 %v1398_v37 }
 0x782   :  { %2054 = vrcp.f32 %v1405_v41 }
 0x78b   :  { %v2053_v43 = vpop.eup %2052 }
 0x78c   :  { %v1409_v44 = vmul.f32 %v2053_v43, %v1408_v42  ;;  %v2055_v49 = vpop.eup %2054 }
 0x78d   :  { %v1412_v50 = vsub.f32 1.0, %v2055_v49  ;;  %v1414_v54 = vmul.f32 %v2055_v49, %v2727_v32 }
 0x78e   :  { %v1410_v48 = vadd.f32 %v1409_v44, %v2789_v46 }
 0x790   :  { %2056 = vtanh.f32 %v1410_v48 }
 0x79a   :  { %v2057_v51 = vpop.eup %2056 }
 0x79b   :  { %v1413_v55 = vmul.f32 %v2057_v51, %v1412_v50 }
 0x79d   :  { %v1415_v57 = vadd.f32 %v1414_v54, %v1413_v55 }
 0x79f   :  { %v1422_v58 = vsel %vm1421_vm0, %v1415_v57, %v2727_v32 }
 0x7a0   :  { %v1429_v7 = vpack.c.bf16 %v1422_v58, %v1422_v58 }
 0x7a2   :  { %1463 = vmatmul.mubr.bf16.vlgmr.msra.gmra.mrb[44].mxu0 %v1429_v7  ;;  %1904 = vmatmul.mubr.bf16.vlgmr.msra.gmra.mrb[36].mxu1 %v1429_v7 }
 0x875   :  { %v1464_v31 = vpop.f32.mrb[44].mxu0  ;;  %v1505_v56 = vpop.f32.mrb[36].mxu1 }
 0x876   :  { %v1511_v62 = vadd.f32 %v1464_v31, %v2790_v28  ;;  %v1466_v61 = vpop.f32.mrb[45].mxu0  ;;  %v1905_v15 = vpop.f32.mrb[37].mxu1  ;;  %v1525_v18 = vadd.f32 %v2472_v1, %v1505_v56 }
 0x877   :  { %v1518_v19 = vadd.f32 %v1466_v61, %v2467_v39  ;;  %v1468_v26 = vpop.f32.mrb[46].mxu0  ;;  %v1508_v27 = vpop.f32.mrb[38].mxu1 }
 0x878   :  { %v1637_v29 = vmul.f32 -1.442695, %v1511_v62  ;;  %v1469_v30 = vpop.f32.mrb[47].mxu0  ;;  %v1906_v33 = vpop.f32.mrb[39].mxu1 }
 0x879   :  { %v1638_v11 = vmul.f32 -1.442695, %v1518_v19 }
 0x87a   :  { %2058 = vpow2.f32 %v1637_v29 }
 0x87b   :  { %2060 = vpow2.f32 %v1638_v11 }
 0x884   :  { %v2059_v32 = vpop.eup %2058 }
 0x885   :  { %v1515_v23 = vadd.f32 1.0, %v2059_v32  ;;  %v2061_v47 = vpop.eup %2060 }
 0x886   :  { %v1522_v60 = vadd.f32 1.0, %v2061_v47 }
 0x887   :  { %2062 = vrcp.f32 %v1515_v23 }
 0x888   :  { %2064 = vrcp.f32 %v1522_v60 }
 0x891   :  { %v2063_v25 = vpop.eup %2062 }
 0x892   :  { %v1526_v53 = vmul.f32 %v2063_v25, %v1525_v18  ;;  %v2065_v59 = vpop.eup %2064 }
 0x893   :  { %v1529_v24 = vsub.f32 1.0, %v2065_v59  ;;  %v1531_v38 = vmul.f32 %v2065_v59, %v1422_v58 }
 0x894   :  { %v1527_v39 = vadd.f32 %v1526_v53, %v2791_v36 }
 0x896   :  { %2066 = vtanh.f32 %v1527_v39 }
 0x8a0   :  { %v2067_v10 = vpop.eup %2066 }
 0x8a1   :  { %v1530_v6 = vmul.f32 %v2067_v10, %v1529_v24 }
 0x8a3   :  { %v1532_v8 = vadd.f32 %v1531_v38, %v1530_v6 }
 0x8a5   :  { %v1539_v45 = vsel %vm1538_vm1, %v1532_v8, %v1422_v58 }
 0x8a6   :  { %1540 = vst [vmem:[#allocation9] sm:$0xff] %v1539_v45 }
 0x8a7   :  { %2169 = shalt.err (!%p2166_p0)
}
 0x8a8   :  { %s2170_s18 = scalar_lea.hbm %s2775_s6, 128 }
 0x8a9   :  { %p2171_p1 = scmp.ne.s32.totalorder %s2775_s6, %s2170_s18  ;;  %p2174_p2 = scmp.lt.u32.totalorder %s2170_s18, %s2775_s6 }
 0x8ab   :  { %p2176_p3 = pnand %p2174_p2, %p2171_p1 }
 0x8ad   :  { %2179 = shalt.err (!%p2176_p3)
}
 0x8ae   :  { %1550 = dma.vmem_to_hbm [thread:$0]  %s1548_s14, 128, %s2775_s6, [#allocation5]  }
 0x8af   :  { %2184 = dma.done.wait [#allocation5], 128  }
 0x8b0   :  { %2185 = vsyncadd [#allocation5], 4294967168 }
 0x8b1   :  { %1554 = vsyncpa [#allocation4], 1 }
 0x8b2   :  { %1555 = vsyncpa [#allocation7], 1 }
 0x8b3   :  { %1556 = vsyncpa [#allocation5], 1 }

</bundles_post_ra>
